<compile_context>
chip_gen: v7x
topology: tpu7x:2x2x1
jax: 0.10.0
libtpu: 0.0.40
codegen_flags: <defaults>
</compile_context>

<pallas_src>
import functools

import jax
import jax.numpy as jnp
from jax.experimental import pallas as pl
from jax.experimental.pallas import tpu as pltpu

SIGMA_DIM = 12
C_DIM = 12
WIDTH = 128
FEAT_DIM = SIGMA_DIM + C_DIM      # 24 channels per plane
MERGED_K = 3 * FEAT_DIM           # 72 = layer-1 contraction after the plane merge
FUSED_WIDTH = 2 * WIDTH           # 256 = [sigma hidden | rgb hidden]
OUT_DIM = 1 + 3                   # [sigma | rgb]


def _softplus(x):
    # Matches torch.nn.Softplus(beta=1, threshold=20): x for x > 20, log1p(exp(x)) else.
    # (exp may overflow to inf in the unselected branch for huge x; where picks x, no NaN.)
    return jnp.where(x > 20.0, x, jnp.log1p(jnp.exp(x)))


def _decoder_kernel(feat_ref, w1_ref, b1_ref, w2_ref, b2_ref, w3_ref, b3_ref,
                    out_ref, *, split_layer2):
    # feat_ref: (3, tile_m, 24) f32   — tri-plane features, planes kept separate
    # w1_ref:   (72, 256)      bf16   — plane-stacked block-diagonal layer-1 weights
    # w2_ref:   (256, 256)     bf16   — block-diag [sigma|rgb] layer-2 weights
    # w3_ref:   (256, 4)       bf16   — block-diag layer-3 weights -> [sigma | rgb]
    # b*_ref:   f32 (1,256)/(1,256)/(1,4)
    # out_ref:  (tile_m, 4) f32

    # Layer 1: merge the three planes along the lane (K) axis -> one MXU pass.
    x = jnp.concatenate(
        [feat_ref[0], feat_ref[1], feat_ref[2]], axis=-1).astype(jnp.bfloat16)
    h1 = jnp.dot(x, w1_ref[...], preferred_element_type=jnp.float32) + b1_ref[...]
    h1 = _softplus(h1)                                         # (tile_m, 256) f32

    if split_layer2:
        # v5e path: two independent 128x128 matmuls (128-wide MXU), statically
        # sliced out of the fused block-diagonal weights (aligned, free).
        hs = h1[:, :WIDTH].astype(jnp.bfloat16)
        hc = h1[:, WIDTH:].astype(jnp.bfloat16)
        hs2 = _softplus(
            jnp.dot(hs, w2_ref[:WIDTH, :WIDTH],
                    preferred_element_type=jnp.float32) + b2_ref[:, :WIDTH])
        hc2 = _softplus(
            jnp.dot(hc, w2_ref[WIDTH:, WIDTH:],
                    preferred_element_type=jnp.float32) + b2_ref[:, WIDTH:])
        z = (jnp.dot(hs2.astype(jnp.bfloat16), w3_ref[:WIDTH, :],
                     preferred_element_type=jnp.float32)
             + jnp.dot(hc2.astype(jnp.bfloat16), w3_ref[WIDTH:, :],
                       preferred_element_type=jnp.float32)
             + b3_ref[...])
    else:
        # v6e/v7x path: fused 256-wide block-diagonal layer 2 (fills the 256-col MXU).
        h2 = _softplus(
            jnp.dot(h1.astype(jnp.bfloat16), w2_ref[...],
                    preferred_element_type=jnp.float32) + b2_ref[...])
        z = jnp.dot(h2.astype(jnp.bfloat16), w3_ref[...],
                    preferred_element_type=jnp.float32) + b3_ref[...]

    # Column 0 = raw sigma, columns 1:4 = sigmoid-squashed rgb.
    rgb = jax.nn.sigmoid(z) * (1.0 + 2.0 * 0.001) - 0.001
    col = jax.lax.broadcasted_iota(jnp.int32, z.shape, 1)
    out_ref[...] = jnp.where(col == 0, z, rgb).astype(out_ref.dtype)


def init_params(key):
    """Deterministic synthetic parameters matching the PyTorch __init__ shapes."""
    ks = jax.random.split(key, 6)

    def fc(k, in_f, out_f):
        # FullyConnectedLayer: weight = randn(out, in) / lr_multiplier (=1), bias = 0
        w = jax.random.normal(k, (out_f, in_f), jnp.float32)
        b = jnp.zeros((out_f,), jnp.float32)
        return w, b

    p = {}
    p["w1s"], p["b1s"] = fc(ks[0], 3 * SIGMA_DIM, WIDTH)
    p["w2s"], p["b2s"] = fc(ks[1], WIDTH, WIDTH)
    p["w3s"], p["b3s"] = fc(ks[2], WIDTH, 1)
    p["w1c"], p["b1c"] = fc(ks[3], 3 * C_DIM, WIDTH)
    p["w2c"], p["b2c"] = fc(ks[4], WIDTH, WIDTH)
    p["w3c"], p["b3c"] = fc(ks[5], WIDTH, 3)
    return p


def _pack_params(params):
    """Fold weight_gain (1/sqrt(in)), transpose to (in, out), fuse sigma/rgb nets
    block-diagonally, stack layer 1 plane-major along K, and cast weights to bf16."""

    def eff(name):
        w = params["w" + name]
        gain = 1.0 / (w.shape[1] ** 0.5)          # lr_multiplier = 1
        return (w * gain).T.astype(jnp.float32)   # (in, out)

    w1s, w1c = eff("1s"), eff("1c")   # (36, 128) each; rows are plane-major
    w2s, w2c = eff("2s"), eff("2c")   # (128, 128)
    w3s, w3c = eff("3s"), eff("3c")   # (128, 1), (128, 3)

    z = jnp.zeros((3, SIGMA_DIM, WIDTH), jnp.float32)
    # Per-plane fused layer-1: input lanes 0:12 = sigma feats, 12:24 = rgb feats;
    # output columns 0:128 = sigma hidden, 128:256 = rgb hidden.
    w1 = jnp.concatenate([
        jnp.concatenate([w1s.reshape(3, SIGMA_DIM, WIDTH), z], axis=-1),
        jnp.concatenate([z, w1c.reshape(3, C_DIM, WIDTH)], axis=-1),
    ], axis=1)                                                        # (3, 24, 256)
    w1 = w1.reshape(MERGED_K, FUSED_WIDTH)                            # (72, 256)

    z128 = jnp.zeros((WIDTH, WIDTH), jnp.float32)
    w2 = jnp.concatenate([
        jnp.concatenate([w2s, z128], axis=1),
        jnp.concatenate([z128, w2c], axis=1),
    ], axis=0)                                                        # (256, 256)

    w3 = jnp.concatenate([
        jnp.concatenate([w3s, jnp.zeros((WIDTH, 3), jnp.float32)], axis=1),
        jnp.concatenate([jnp.zeros((WIDTH, 1), jnp.float32), w3c], axis=1),
    ], axis=0)                                                        # (256, 4)

    b1 = jnp.concatenate([params["b1s"], params["b1c"]]).reshape(1, FUSED_WIDTH).astype(jnp.float32)
    b2 = jnp.concatenate([params["b2s"], params["b2c"]]).reshape(1, FUSED_WIDTH).astype(jnp.float32)
    b3 = jnp.concatenate([params["b3s"], params["b3c"]]).reshape(1, OUT_DIM).astype(jnp.float32)

    return (w1.astype(jnp.bfloat16), b1,
            w2.astype(jnp.bfloat16), b2,
            w3.astype(jnp.bfloat16), b3)


def _device_defaults():
    """Trace-time chip dispatch.  Unknown chips get the conservative v7x settings."""
    try:
        kind = jax.devices()[0].device_kind.lower()
    except Exception:  # pragma: no cover - no accelerator visible
        kind = ""
    if "v5" in kind:
        # 128-wide MXU, 128 MiB VMEM, 1 TC.
        return dict(tile_m=8192, vmem=96 * 1024 * 1024, split_l2=True, min_steps=1)
    if "v6" in kind:
        # 256-wide MXU, 128 MiB VMEM, 1 TC.
        return dict(tile_m=8192, vmem=96 * 1024 * 1024, split_l2=False, min_steps=1)
    # v7x (64 MiB VMEM per TC, 2 TCs) or unknown: conservative + megacore balance.
    return dict(tile_m=4096, vmem=48 * 1024 * 1024, split_l2=False, min_steps=4)


def _choose_tile(M, N, tile_m, min_steps):
    """Pick a row tile: as large as allowed, but with >= min_steps grid steps total
    (megacore balance on v7x) and 8-aligned unless it covers the full M extent."""
    steps_per_n = max(1, -(-min_steps // max(N, 1)))     # ceil(min_steps / N)
    t = -(-M // steps_per_n)                             # ceil(M / steps_per_n)
    t = min(int(tile_m), t)
    if t >= M:
        return M                                         # single block == full dim
    return max(8, (t // 8) * 8)


def triplane_decoder_decompose(sampled_features, viewdir, params, *,
                               tile_m=None, force_split_layer2=None):
    """Pallas forward. viewdir is unused (matches the PyTorch module)."""
    del viewdir
    N, P, M, C = sampled_features.shape
    assert P == 3 and C == FEAT_DIM

    cfg = _device_defaults()
    tile_m = cfg["tile_m"] if tile_m is None else int(tile_m)
    split_l2 = cfg["split_l2"] if force_split_layer2 is None else bool(force_split_layer2)

    # Large tiles amortize the ~0.35us per-grid-step overhead; partial tail blocks
    # are handled by Pallas input-padding / masked output writes (no jnp.pad).
    tile = _choose_tile(M, N, tile_m, cfg["min_steps"])
    grid = (N, pl.cdiv(M, tile))

    w1, b1, w2, b2, w3, b3 = _pack_params(params)

    def const_spec(shape):
        return pl.BlockSpec(shape, lambda n, m: (0,) * len(shape))

    in_specs = [
        pl.BlockSpec((None, 3, tile, FEAT_DIM), lambda n, m: (n, 0, m, 0)),
        const_spec(w1.shape), const_spec(b1.shape),
        const_spec(w2.shape), const_spec(b2.shape),
        const_spec(w3.shape), const_spec(b3.shape),
    ]
    out_specs = pl.BlockSpec((None, tile, OUT_DIM), lambda n, m: (n, m, 0))
    out_shape = jax.ShapeDtypeStruct((N, M, OUT_DIM), jnp.float32)

    NM = N * M
    flops = 2 * NM * (MERGED_K * FUSED_WIDTH + FUSED_WIDTH * FUSED_WIDTH
                      + FUSED_WIDTH * OUT_DIM)
    transcendentals = NM * (2 * FUSED_WIDTH + OUT_DIM)
    bytes_accessed = (sampled_features.size * 4 + NM * OUT_DIM * 4
                      + (w1.size + w2.size + w3.size) * 2
                      + (b1.size + b2.size + b3.size) * 4)

    fused = pl.pallas_call(
        functools.partial(_decoder_kernel, split_layer2=split_l2),
        grid=grid,
        in_specs=in_specs,
        out_specs=out_specs,
        out_shape=out_shape,
        compiler_params=pltpu.CompilerParams(
            dimension_semantics=("parallel", "parallel"),
            vmem_limit_bytes=cfg["vmem"]),
        cost_estimate=pl.CostEstimate(
            flops=flops,
            transcendentals=transcendentals,
            bytes_accessed=bytes_accessed),
    )(sampled_features, w1, b1, w2, b2, w3, b3)

    return {"rgb": fused[..., 1:OUT_DIM], "sigma": fused[..., 0:1]}


def reference_forward(sampled_features, params, matmul_dtype=jnp.float32):
    """Pure-JAX reference mirroring the PyTorch module semantics (optionally with
    bf16 matmul operands to mirror the kernel's MXU precision exactly)."""
    N, _, M, _ = sampled_features.shape
    sig = sampled_features[..., :SIGMA_DIM]
    rgbf = sampled_features[..., -C_DIM:]
    sig = jnp.transpose(sig, (0, 2, 1, 3)).reshape(N * M, 3 * SIGMA_DIM)
    rgbf = jnp.transpose(rgbf, (0, 2, 1, 3)).reshape(N * M, 3 * C_DIM)

    def fc(x, wname, bname):
        w = params[wname]
        b = params[bname]
        we = (w * (1.0 / (w.shape[1] ** 0.5))).T
        y = jnp.dot(x.astype(matmul_dtype), we.astype(matmul_dtype),
                    preferred_element_type=jnp.float32)
        return y + b[None, :].astype(jnp.float32)

    h = _softplus(fc(sig, "w1s", "b1s"))
    h = _softplus(fc(h, "w2s", "b2s"))
    sigma = fc(h, "w3s", "b3s")

    g = _softplus(fc(rgbf, "w1c", "b1c"))
    g = _softplus(fc(g, "w2c", "b2c"))
    rgb = fc(g, "w3c", "b3c")
    rgb = jax.nn.sigmoid(rgb) * (1.0 + 2.0 * 0.001) - 0.001

    return {"rgb": rgb.reshape(N, M, 3), "sigma": sigma.reshape(N, M, 1)}


if __name__ == "__main__":
    key = jax.random.PRNGKey(0)
    k_feat, k_view, k_params = jax.random.split(key, 3)

    N, M = 2, 200                       # small test shapes
    C = SIGMA_DIM + C_DIM               # 24
    sampled_features = jax.random.normal(k_feat, (N, 3, M, C), jnp.float32)
    viewdir = jax.random.normal(k_view, (N, M, 3), jnp.float32)  # unused, as in PyTorch
    params = init_params(k_params)

    fwd = jax.jit(triplane_decoder_decompose,
                  static_argnames=("tile_m", "force_split_layer2"))

    default_split = _device_defaults()["split_l2"]

    out = fwd(sampled_features, viewdir, params)                      # device-default path
    out_small = fwd(sampled_features, viewdir, params, tile_m=64)     # partial tail block
    out_alt = fwd(sampled_features, viewdir, params,                  # other layer-2 path
                  force_split_layer2=(not default_split))
    jax.block_until_ready((out, out_small, out_alt))

    assert out["rgb"].shape == (N, M, 3) and out["sigma"].shape == (N, M, 1)

    # Tight check vs. a reference that mirrors the kernel's bf16 matmul operands.
    ref_bf16 = reference_forward(sampled_features, params, matmul_dtype=jnp.bfloat16)
    for o in (out, out_small, out_alt):
        assert jnp.allclose(o["rgb"], ref_bf16["rgb"], atol=1e-3, rtol=1e-3)
        assert jnp.allclose(o["sigma"], ref_bf16["sigma"], atol=1e-3, rtol=1e-3)

    # Sanity check vs. the full-f32 reference (only bf16 operand rounding differs).
    ref_f32 = reference_forward(sampled_features, params, matmul_dtype=jnp.float32)
    assert jnp.allclose(out["rgb"], ref_f32["rgb"], atol=5e-2, rtol=5e-2)
    assert jnp.allclose(out["sigma"], ref_f32["sigma"], atol=5e-2, rtol=5e-2)

    print("KERNEL_OK")
</pallas_src>

<mosaic_0001>
module attributes {stable_mosaic.version = 11 : i64} {
  func.func @_decoder_kernel(%arg0: i32, %arg1: i32, %arg2: memref<1x3x96x24xf32, #tpu.memory_space<vmem>>, %arg3: memref<72x256xbf16, #tpu.memory_space<vmem>>, %arg4: memref<1x256xf32, #tpu.memory_space<vmem>>, %arg5: memref<256x256xbf16, #tpu.memory_space<vmem>>, %arg6: memref<1x256xf32, #tpu.memory_space<vmem>>, %arg7: memref<256x4xbf16, #tpu.memory_space<vmem>>, %arg8: memref<1x4xf32, #tpu.memory_space<vmem>>, %arg9: memref<1x96x4xf32, #tpu.memory_space<vmem>>) attributes {dimension_semantics = [#tpu.dimension_semantics<parallel>, #tpu.dimension_semantics<parallel>], iteration_bounds = array<i64: 2, 3>, scalar_prefetch = 0 : i64, scratch_operands = 0 : i64, tpu.core_type = #tpu.core_type<tc>, window_params = [{transform_indices = @transform_0, window_bounds = array<i64: 1, 3, 96, 24>}, {pipeline_mode = #tpu.pipeline_mode<synchronous>, transform_indices = @transform_1, window_bounds = array<i64: 72, 256>}, {pipeline_mode = #tpu.pipeline_mode<synchronous>, transform_indices = @transform_2, window_bounds = array<i64: 1, 256>}, {pipeline_mode = #tpu.pipeline_mode<synchronous>, transform_indices = @transform_3, window_bounds = array<i64: 256, 256>}, {pipeline_mode = #tpu.pipeline_mode<synchronous>, transform_indices = @transform_4, window_bounds = array<i64: 1, 256>}, {pipeline_mode = #tpu.pipeline_mode<synchronous>, transform_indices = @transform_5, window_bounds = array<i64: 256, 4>}, {pipeline_mode = #tpu.pipeline_mode<synchronous>, transform_indices = @transform_6, window_bounds = array<i64: 1, 4>}, {transform_indices = @transform_7, window_bounds = array<i64: 1, 96, 4>}]} {
    %c0 = arith.constant 0 : index
    %c0_0 = arith.constant 0 : index
    %c0_1 = arith.constant 0 : index
    %c0_2 = arith.constant 0 : index
    %0 = vector.load %arg2[%c0, %c0_0, %c0_1, %c0_2] : memref<1x3x96x24xf32, #tpu.memory_space<vmem>>, vector<1x1x96x24xf32>
    %1 = vector.shape_cast %0 : vector<1x1x96x24xf32> to vector<96x24xf32>
    %c0_3 = arith.constant 0 : index
    %c1 = arith.constant 1 : index
    %c0_4 = arith.constant 0 : index
    %c0_5 = arith.constant 0 : index
    %2 = vector.load %arg2[%c0_3, %c1, %c0_4, %c0_5] : memref<1x3x96x24xf32, #tpu.memory_space<vmem>>, vector<1x1x96x24xf32>
    %3 = vector.shape_cast %2 : vector<1x1x96x24xf32> to vector<96x24xf32>
    %c0_6 = arith.constant 0 : index
    %c2 = arith.constant 2 : index
    %c0_7 = arith.constant 0 : index
    %c0_8 = arith.constant 0 : index
    %4 = vector.load %arg2[%c0_6, %c2, %c0_7, %c0_8] : memref<1x3x96x24xf32, #tpu.memory_space<vmem>>, vector<1x1x96x24xf32>
    %5 = vector.shape_cast %4 : vector<1x1x96x24xf32> to vector<96x24xf32>
    %6 = tpu.concatenate %1, %3, %5 in 1 : vector<96x24xf32>, vector<96x24xf32>, vector<96x24xf32> -> vector<96x72xf32>
    %7 = arith.truncf %6 : vector<96x72xf32> to vector<96x72xbf16>
    %c0_9 = arith.constant 0 : index
    %c0_10 = arith.constant 0 : index
    %8 = vector.load %arg3[%c0_9, %c0_10] : memref<72x256xbf16, #tpu.memory_space<vmem>>, vector<72x256xbf16>
    %cst = arith.constant dense<0.000000e+00> : vector<96x256xf32>
    %9 = tpu.matmul %7, %8, %cst {dimension_numbers = #tpu.dot_dimension_numbers<[1], [0], [0], [1], [0, 0, 1, 1], [], []>} : vector<96x72xbf16>, vector<72x256xbf16>, vector<96x256xf32> -> vector<96x256xf32>
    %c0_11 = arith.constant 0 : index
    %c0_12 = arith.constant 0 : index
    %10 = vector.load %arg4[%c0_11, %c0_12] : memref<1x256xf32, #tpu.memory_space<vmem>>, vector<1x256xf32>
    %11 = vector.broadcast %10 : vector<1x256xf32> to vector<96x256xf32>
    %12 = arith.addf %9, %11 : vector<96x256xf32>
    %cst_13 = arith.constant 2.000000e+01 : f32
    %13 = vector.broadcast %cst_13 : f32 to vector<96x256xf32>
    %14 = arith.cmpf ogt, %12, %13 : vector<96x256xf32>
    %15 = math.exp %12 : vector<96x256xf32>
    %16 = math.log1p %15 : vector<96x256xf32>
    %17 = arith.select %14, %12, %16 : vector<96x256xi1>, vector<96x256xf32>
    %18 = arith.truncf %17 : vector<96x256xf32> to vector<96x256xbf16>
    %c0_14 = arith.constant 0 : index
    %c0_15 = arith.constant 0 : index
    %19 = vector.load %arg5[%c0_14, %c0_15] : memref<256x256xbf16, #tpu.memory_space<vmem>>, vector<256x256xbf16>
    %cst_16 = arith.constant dense<0.000000e+00> : vector<96x256xf32>
    %20 = tpu.matmul %18, %19, %cst_16 {dimension_numbers = #tpu.dot_dimension_numbers<[1], [0], [0], [1], [0, 0, 1, 1], [], []>} : vector<96x256xbf16>, vector<256x256xbf16>, vector<96x256xf32> -> vector<96x256xf32>
    %c0_17 = arith.constant 0 : index
    %c0_18 = arith.constant 0 : index
    %21 = vector.load %arg6[%c0_17, %c0_18] : memref<1x256xf32, #tpu.memory_space<vmem>>, vector<1x256xf32>
    %22 = vector.broadcast %21 : vector<1x256xf32> to vector<96x256xf32>
    %23 = arith.addf %20, %22 : vector<96x256xf32>
    %cst_19 = arith.constant 2.000000e+01 : f32
    %24 = vector.broadcast %cst_19 : f32 to vector<96x256xf32>
    %25 = arith.cmpf ogt, %23, %24 : vector<96x256xf32>
    %26 = math.exp %23 : vector<96x256xf32>
    %27 = math.log1p %26 : vector<96x256xf32>
    %28 = arith.select %25, %23, %27 : vector<96x256xi1>, vector<96x256xf32>
    %29 = arith.truncf %28 : vector<96x256xf32> to vector<96x256xbf16>
    %c0_20 = arith.constant 0 : index
    %c0_21 = arith.constant 0 : index
    %30 = vector.load %arg7[%c0_20, %c0_21] : memref<256x4xbf16, #tpu.memory_space<vmem>>, vector<256x4xbf16>
    %cst_22 = arith.constant dense<0.000000e+00> : vector<96x4xf32>
    %31 = tpu.matmul %29, %30, %cst_22 {dimension_numbers = #tpu.dot_dimension_numbers<[1], [0], [0], [1], [0, 0, 1, 1], [], []>} : vector<96x256xbf16>, vector<256x4xbf16>, vector<96x4xf32> -> vector<96x4xf32>
    %c0_23 = arith.constant 0 : index
    %c0_24 = arith.constant 0 : index
    %32 = vector.load %arg8[%c0_23, %c0_24] : memref<1x4xf32, #tpu.memory_space<vmem>>, vector<1x4xf32>
    %33 = vector.broadcast %32 : vector<1x4xf32> to vector<96x4xf32>
    %34 = arith.addf %31, %33 : vector<96x4xf32>
    %35 = arith.negf %34 : vector<96x4xf32>
    %36 = math.exp %35 : vector<96x4xf32>
    %cst_25 = arith.constant 1.000000e+00 : f32
    %37 = vector.broadcast %cst_25 : f32 to vector<96x4xf32>
    %38 = arith.addf %37, %36 : vector<96x4xf32>
    %39 = arith.divf %37, %38 : vector<96x4xf32>
    %cst_26 = arith.constant 1.002000e+00 : f32
    %40 = vector.broadcast %cst_26 : f32 to vector<96x4xf32>
    %41 = arith.mulf %39, %40 : vector<96x4xf32>
    %cst_27 = arith.constant 1.000000e-03 : f32
    %42 = vector.broadcast %cst_27 : f32 to vector<96x4xf32>
    %43 = arith.subf %41, %42 : vector<96x4xf32>
    %44 = tpu.iota {dimensions = array<i32: 1>} : vector<96x4xi32>
    %c0_i32 = arith.constant 0 : i32
    %45 = vector.broadcast %c0_i32 : i32 to vector<96x4xi32>
    %46 = arith.cmpi eq, %44, %45 : vector<96x4xi32>
    %47 = arith.select %46, %34, %43 : vector<96x4xi1>, vector<96x4xf32>
    %c0_28 = arith.constant 0 : index
    %c0_29 = arith.constant 0 : index
    %c0_30 = arith.constant 0 : index
    %48 = vector.load %arg9[%c0_28, %c0_29, %c0_30] : memref<1x96x4xf32, #tpu.memory_space<vmem>>, vector<1x96x4xf32>
    %49 = vector.shape_cast %48 : vector<1x96x4xf32> to vector<96x4xf32>
    %50 = vector.shape_cast %47 : vector<96x4xf32> to vector<1x96x4xf32>
    tpu.vector_store %arg9[%c0_28, %c0_29, %c0_30], %50 {strides = array<i32>} : memref<1x96x4xf32, #tpu.memory_space<vmem>>, vector<1x96x4xf32>,
    return
  }
  func.func @transform_0(%arg0: i32, %arg1: i32) -> (i32, i32, i32, i32) {
    %c0_i32 = arith.constant 0 : i32
    %c0_i32_0 = arith.constant 0 : i32
    %c0_i32_1 = arith.constant 0 : i32
    return %arg0, %c0_i32, %arg1, %c0_i32_0 : i32, i32, i32, i32
  }
  func.func @transform_1(%arg0: i32, %arg1: i32) -> (i32, i32) {
    %c0_i32 = arith.constant 0 : i32
    %c0_i32_0 = arith.constant 0 : i32
    %c0_i32_1 = arith.constant 0 : i32
    return %c0_i32, %c0_i32_0 : i32, i32
  }
  func.func @transform_2(%arg0: i32, %arg1: i32) -> (i32, i32) {
    %c0_i32 = arith.constant 0 : i32
    %c0_i32_0 = arith.constant 0 : i32
    %c0_i32_1 = arith.constant 0 : i32
    return %c0_i32, %c0_i32_0 : i32, i32
  }
  func.func @transform_3(%arg0: i32, %arg1: i32) -> (i32, i32) {
    %c0_i32 = arith.constant 0 : i32
    %c0_i32_0 = arith.constant 0 : i32
    %c0_i32_1 = arith.constant 0 : i32
    return %c0_i32, %c0_i32_0 : i32, i32
  }
  func.func @transform_4(%arg0: i32, %arg1: i32) -> (i32, i32) {
    %c0_i32 = arith.constant 0 : i32
    %c0_i32_0 = arith.constant 0 : i32
    %c0_i32_1 = arith.constant 0 : i32
    return %c0_i32, %c0_i32_0 : i32, i32
  }
  func.func @transform_5(%arg0: i32, %arg1: i32) -> (i32, i32) {
    %c0_i32 = arith.constant 0 : i32
    %c0_i32_0 = arith.constant 0 : i32
    %c0_i32_1 = arith.constant 0 : i32
    return %c0_i32, %c0_i32_0 : i32, i32
  }
  func.func @transform_6(%arg0: i32, %arg1: i32) -> (i32, i32) {
    %c0_i32 = arith.constant 0 : i32
    %c0_i32_0 = arith.constant 0 : i32
    %c0_i32_1 = arith.constant 0 : i32
    return %c0_i32, %c0_i32_0 : i32, i32
  }
  func.func @transform_7(%arg0: i32, %arg1: i32) -> (i32, i32, i32) {
    %c0_i32 = arith.constant 0 : i32
    %c0_i32_0 = arith.constant 0 : i32
    return %arg0, %arg1, %c0_i32 : i32, i32, i32
  }
}

</mosaic_0001>

<bundles_post_ra>
// kernel: triplane_decoder_decompose.1
= control target key start
LH: loop header
LB: loop body
LE: loop exit
PB: predicated region body
PF: predicated region fallthrough
CT: control target
= control target key end

     0   :  { %s5017_s0 = inlined_call_operand.vmem [shape: f32[2,3,200,24], index: 0, kind: input, shape index: {}]   ;;  %s5018_s1 = inlined_call_operand.vmem [shape: bf16[72,256], index: 1, kind: input, shape index: {}]   ;;  %s5019_s2 = inlined_call_operand.vmem [shape: f32[1,256], index: 2, kind: input, shape index: {}]   ;;  %s5020_s3 = inlined_call_operand.vmem [shape: bf16[256,256], index: 3, kind: input, shape index: {}]   ;;  %s5021_s4 = inlined_call_operand.vmem [shape: f32[1,256], index: 4, kind: input, shape index: {}]   ;;  %s5022_s5 = inlined_call_operand.vmem [shape: bf16[256,4], index: 5, kind: input, shape index: {}]   ;;  %s5023_s6 = inlined_call_operand.vmem [shape: f32[1,4], index: 6, kind: input, shape index: {}]   ;;  %s5024_s7 = inlined_call_operand.vmem [shape: f32[2,200,4], index: 7, kind: output, shape index: {}]  }
   0x1   :  { %5027 = sst [smem:[#allocation6_spill]] %s5017_s0 }
   0x2   :  { %s3530_s24 = smov 0   ;;  %s3532_s25 = smov 0  }
   0x3   :  { %s3534_s26 = smov 0   ;;  %s3536_s27 = smov 0  }
   0x4   :  { %s3538_s28 = smov 0   ;;  %s3540_s29 = smov 0  }
   0x5   :  { %s3542_s30 = smov 0  }
   0x6 LB: > { %s26_s8 = sadd.s32 1, %s3413_s28  ;;  %s29_s9 = sadd.s32 1, %s3417_s29  ;;  %s3421_s30 = sphi %s3542_s30, %s17_s30   ;;  %s3417_s29 = sphi %s3540_s29, %s5116_s29   ;;  %s3413_s28 = sphi %s3538_s28, %s5115_s28   ;;  %s3409_s27 = sphi %s3536_s27, %s5114_s27   ;;  %s3405_s26 = sphi %s3534_s26, %s5113_s26   ;;  %s3401_s25 = sphi %s3532_s25, %s5112_s25   ;;  %s3397_s24 = sphi %s3530_s24, %s5111_s24  }
   0x7   : > { %p27_p0 = scmp.ge.s32.totalorder %s26_s8, 3  ;;  %s2531_s10 = sadd.s32 4294967295, %s3421_s30  }
   0x8   : > { %p45_p1 = scmp.ne.s32.totalorder %s3401_s25, %s3397_s24  ;;  %p46_p2 = scmp.eq.s32.totalorder %s3421_s30, 0 }
   0x9   : > { %s5118_s8 = smov (%p27_p0, %s26_s8), 0  ;;  %s5120_s9 = smov (!%p27_p0, %s29_s9), %s3417_s29 }
   0xa   : > { %5028 = sst [smem:[#allocation4_spill]] %s5118_s8  ;;  %p31_p3 = scmp.ge.s32.totalorder %s5120_s9, 2 }
   0xb   : > { %p203_p4 = scmp.eq.s32.totalorder %s2531_s10, 5  ;;  %s34_s11 = ssub.s32 %s3413_s28, %s5118_s8 }
   0xc   : > { %p47_p5 = por %p46_p2, %p45_p1  ;;  %s5122_s9 = smov (%p31_p3, %s5120_s9), 0 }
   0xd   : > { %5029 = sst [smem:[#allocation5_spill]] %s5122_s9  ;;  %p3578_p6 = por %p203_p4, %p45_p1 }
   0xe   : > { %s33_s13 = ssub.s32 %s3417_s29, %s5122_s9  ;;  %s38_s15 = sadd.s32 1, %s3401_s25 }
   0xf   : > { %s35_s14 = sor.u32 %s34_s11, %s33_s13  ;;  %p2534_p8 = scmp.ge.s32.totalorder %s3421_s30, 6 }
  0x10   : > { %p36_p7 = scmp.eq.s32.totalorder %s35_s14, 0 }
  0x11   : > { %243 = sbr.rel (%p2534_p8) target bundleno = 102 (0x66), region = 40 }
  0x12   : > { %s3586_s16 = scalar_select %p36_p7, %s3401_s25, %s38_s15  }
  0x18   : > { %246 = sbr.rel (!%p47_p5) target bundleno = 102 (0x66), region = 44  ;;  %s248_s17 = sand.u32 (%p47_p5), 1, %s3401_s25  }
  0x19   : > { %s251_s18 = smul.u32 (%p47_p5), 12, %s3413_s28  ;;  %s5031_s0 = sld [smem:[#allocation6_spill]] (%p47_p5) }
  0x1a   : > { %s2723_s19 = smul.u32 (%p47_p5), 288, %s248_s17 }
  0x1b   : > { %s252_s20 = ssub.s32 (%p47_p5), 25, %s251_s18  ;;  %s2724_s21 = smul.u32 (%p47_p5), 75, %s3417_s29 }
  0x1c   : > { %p253_p9 = scmp.lt.s32.totalorder (%p47_p5), %s252_s20, 12  ;;  %s3600_s15 = scalar_lea.vmem (%p47_p5), [#allocation2], %s2723_s19  }
  0x1d   : > { %s258_s22 = sadd.s32 (%p47_p5), %s2724_s21, %s251_s18 }
  0x1e   : > { %s2536_s23 = sshll.u32 (%p47_p5), %s258_s22, 3 }
  0x1f   : > { %s5124_s20 = smov (!%p253_p9, %s252_s20), 12  ;;  %s3598_s14 = scalar_lea.vmem %s5031_s0, %s2536_s23  }
  0x20   : > { %s255_s10 = smul.u32 384, %s5124_s20 }
  0x22   : > { %p2537_p10 = scmp.eq.s32.totalorder %s255_s10, 0 }
  0x23   : > { %2917 = sdivrem.u32 (!%p2537_p10), %s5124_s20, 12 }
  0x24   : > { %263 = sbr.rel (%p2537_p10) target bundleno = 102 (0x66), region = 48 }
  0x2c   : > { %s3603_s17 = spop.drf %2917 }
  0x2d   : > { %p2538_p11 = scmp.le.s32.totalorder %s3603_s17, 0 }
  0x2e   : > { %s5032_s18 = smov (!%p2538_p11), %s3600_s15  ;;  %s5033_s21 = smov (!%p2538_p11), %s3598_s14 }
  0x2f   : > { %2448 = sbr.rel (%p2538_p11) target bundleno = 73 (0x49), region = 199  ;;  %s3612_s22 = smov (!%p2538_p11), 0  }
  0x30   : > { %s3614_s23 = smov (!%p2538_p11), 0  }
  0x36 LB: >> { %v401_v0 = vld [vmem:[%s3429_s21] sm:$0xff]  ;;  %v403_v1 = vld [vmem:[%s3429_s21 + $0x8] sm:$0xff]  ;;  %v405_v2 = vld [vmem:[%s3429_s21 + $0x10] sm:$0xff]  ;;  %s473_s19 = sadd.s32 1, %s3433_s22  ;;  %s395_s23 = sadd.s32 1, %s3437_s23   ;;  %s3437_s23 = sphi %s3614_s23, %s395_s23   ;;  %s3433_s22 = sphi %s3612_s22, %s5036_s22   ;;  %s3429_s21 = sphi %s5033_s21, %s5035_s21   ;;  %s3425_s18 = sphi %s5032_s18, %s5034_s18  }
  0x37   : >> { %402 = vst [vmem:[%s3425_s18] sm:$0xff] %v401_v0  ;;  %404 = vst [vmem:[%s3425_s18 + $0x8] sm:$0xff] %v403_v1  ;;  %v407_v3 = vld [vmem:[%s3429_s21 + $0x18] sm:$0xff]  ;;  %v409_v4 = vld [vmem:[%s3429_s21 + $0x20] sm:$0xff]  ;;  %p474_p12 = scmp.ge.s32.totalorder %s473_s19, %s3603_s17  ;;  %p394_p13 = scmp.ge.s32.totalorder %s395_s23, %s3603_s17 }
  0x38   : >> { %406 = vst [vmem:[%s3425_s18 + $0x10] sm:$0xff] %v405_v2  ;;  %v411_v5 = vld [vmem:[%s3429_s21 + $0x28] sm:$0xff]  ;;  %408 = vst [vmem:[%s3425_s18 + $0x18] sm:$0xff] %v407_v3  ;;  %v413_v6 = vld [vmem:[%s3429_s21 + $0x30] sm:$0xff] }
  0x39   : >> { %410 = vst [vmem:[%s3425_s18 + $0x20] sm:$0xff] %v409_v4  ;;  %412 = vst [vmem:[%s3425_s18 + $0x28] sm:$0xff] %v411_v5  ;;  %v415_v7 = vld [vmem:[%s3429_s21 + $0x38] sm:$0xff]  ;;  %v417_v8 = vld [vmem:[%s3429_s21 + $0x40] sm:$0xff]  ;;  %s5126_s19 = smov (%p474_p12, %s473_s19), 0 }
  0x3a   : >> { %414 = vst [vmem:[%s3425_s18 + $0x30] sm:$0xff] %v413_v6  ;;  %416 = vst [vmem:[%s3425_s18 + $0x38] sm:$0xff] %v415_v7  ;;  %v419_v9 = vld [vmem:[%s3429_s21 + $0x48] sm:$0xff]  ;;  %v421_v10 = vld [vmem:[%s3429_s21 + $0x50] sm:$0xff]  ;;  %s476_s10 = smul.u32 96, %s5126_s19  ;;  %s5036_s22 = smov %s5126_s19 }
  0x3b   : >> { %418 = vst [vmem:[%s3425_s18 + $0x40] sm:$0xff] %v417_v8  ;;  %v423_v11 = vld [vmem:[%s3429_s21 + $0x58] sm:$0xff]  ;;  %420 = vst [vmem:[%s3425_s18 + $0x48] sm:$0xff] %v419_v9  ;;  %v425_v12 = vld [vmem:[%s3429_s21 + $0xc8] sm:$0xff] }
  0x3c   : >> { %422 = vst [vmem:[%s3425_s18 + $0x50] sm:$0xff] %v421_v10  ;;  %424 = vst [vmem:[%s3425_s18 + $0x58] sm:$0xff] %v423_v11  ;;  %v427_v13 = vld [vmem:[%s3429_s21 + $0xd0] sm:$0xff]  ;;  %v429_v14 = vld [vmem:[%s3429_s21 + $0xd8] sm:$0xff]  ;;  %s3676_s11 = scalar_lea.vmem %s3598_s14, %s476_s10   ;;  %s3679_s13 = scalar_lea.vmem %s3600_s15, %s476_s10 [#allocation2]  }
  0x3d   : >> { %426 = vst [vmem:[%s3425_s18 + $0x60] sm:$0xff] %v425_v12  ;;  %428 = vst [vmem:[%s3425_s18 + $0x68] sm:$0xff] %v427_v13  ;;  %v431_v15 = vld [vmem:[%s3429_s21 + $0xe0] sm:$0xff]  ;;  %v433_v16 = vld [vmem:[%s3429_s21 + $0xe8] sm:$0xff] }
  0x3e   : >> { %430 = vst [vmem:[%s3425_s18 + $0x70] sm:$0xff] %v429_v14  ;;  %v435_v17 = vld [vmem:[%s3429_s21 + $0xf0] sm:$0xff]  ;;  %432 = vst [vmem:[%s3425_s18 + $0x78] sm:$0xff] %v431_v15  ;;  %v437_v18 = vld [vmem:[%s3429_s21 + $0xf8] sm:$0xff] }
  0x3f   : >> { %434 = vst [vmem:[%s3425_s18 + $0x80] sm:$0xff] %v433_v16  ;;  %436 = vst [vmem:[%s3425_s18 + $0x88] sm:$0xff] %v435_v17  ;;  %v439_v19 = vld [vmem:[%s3429_s21 + $0x100] sm:$0xff]  ;;  %v441_v20 = vld [vmem:[%s3429_s21 + $0x108] sm:$0xff] }
  0x40   : >> { %438 = vst [vmem:[%s3425_s18 + $0x90] sm:$0xff] %v437_v18  ;;  %440 = vst [vmem:[%s3425_s18 + $0x98] sm:$0xff] %v439_v19  ;;  %v443_v21 = vld [vmem:[%s3429_s21 + $0x110] sm:$0xff]  ;;  %v445_v22 = vld [vmem:[%s3429_s21 + $0x118] sm:$0xff] }
  0x41   : >> { %442 = vst [vmem:[%s3425_s18 + $0xa0] sm:$0xff] %v441_v20  ;;  %v447_v23 = vld [vmem:[%s3429_s21 + $0x120] sm:$0xff]  ;;  %444 = vst [vmem:[%s3425_s18 + $0xa8] sm:$0xff] %v443_v21  ;;  %v449_v24 = vld [vmem:[%s3429_s21 + $0x190] sm:$0xff] }
  0x42   : >> { %446 = vst [vmem:[%s3425_s18 + $0xb0] sm:$0xff] %v445_v22  ;;  %448 = vst [vmem:[%s3425_s18 + $0xb8] sm:$0xff] %v447_v23  ;;  %v451_v25 = vld [vmem:[%s3429_s21 + $0x198] sm:$0xff]  ;;  %v453_v26 = vld [vmem:[%s3429_s21 + $0x1a0] sm:$0xff]  ;;  %397 = sbr.rel (!%p394_p13) target bundleno = 54 (0x36), region = 205 }
  0x43   : >> { %450 = vst [vmem:[%s3425_s18 + $0xc0] sm:$0xff] %v449_v24  ;;  %452 = vst [vmem:[%s3425_s18 + $0xc8] sm:$0xff] %v451_v25  ;;  %v455_v27 = vld [vmem:[%s3429_s21 + $0x1a8] sm:$0xff]  ;;  %v457_v28 = vld [vmem:[%s3429_s21 + $0x1b0] sm:$0xff] }
  0x44   : >> { %454 = vst [vmem:[%s3425_s18 + $0xd0] sm:$0xff] %v453_v26  ;;  %v459_v29 = vld [vmem:[%s3429_s21 + $0x1b8] sm:$0xff]  ;;  %456 = vst [vmem:[%s3425_s18 + $0xd8] sm:$0xff] %v455_v27  ;;  %v461_v30 = vld [vmem:[%s3429_s21 + $0x1c0] sm:$0xff] }
  0x45   : >> { %458 = vst [vmem:[%s3425_s18 + $0xe0] sm:$0xff] %v457_v28  ;;  %460 = vst [vmem:[%s3425_s18 + $0xe8] sm:$0xff] %v459_v29  ;;  %v463_v31 = vld [vmem:[%s3429_s21 + $0x1c8] sm:$0xff]  ;;  %v465_v32 = vld [vmem:[%s3429_s21 + $0x1d0] sm:$0xff] }
  0x46   : >> { %462 = vst [vmem:[%s3425_s18 + $0xf0] sm:$0xff] %v461_v30  ;;  %464 = vst [vmem:[%s3425_s18 + $0xf8] sm:$0xff] %v463_v31  ;;  %v467_v33 = vld [vmem:[%s3429_s21 + $0x1d8] sm:$0xff]  ;;  %v469_v34 = vld [vmem:[%s3429_s21 + $0x1e0] sm:$0xff] }
  0x47   : >> { %466 = vst [vmem:[%s3425_s18 + $0x100] sm:$0xff] %v465_v32  ;;  %v471_v35 = vld [vmem:[%s3429_s21 + $0x1e8] sm:$0xff]  ;;  %468 = vst [vmem:[%s3425_s18 + $0x108] sm:$0xff] %v467_v33  ;;  %s5035_s21 = smov %s3676_s11 }
  0x48   : >> { %470 = vst [vmem:[%s3425_s18 + $0x110] sm:$0xff] %v469_v34  ;;  %472 = vst [vmem:[%s3425_s18 + $0x118] sm:$0xff] %v471_v35  ;;  %s5034_s18 = smov %s3679_s13 }
  0x49 PF: > { %2919 = sdivrem.u32 %s5124_s20, 12 }
  0x4a   : > { %s2539_s10 = smul.u32 96, %s3603_s17 }
  0x4c   : > { %s3724_s0 = scalar_lea.vmem %s3598_s14, %s2539_s10   ;;  %s3727_s9 = scalar_lea.vmem %s3600_s15, %s2539_s10 [#allocation2]  }
  0x52   : > { %s3729_s8 = spop.drf %2919 }
  0x53   : > { %p2541_p0 = scmp.le.s32.totalorder %s3729_s8, 0 }
  0x54   : > { %s5037_s23 = smov (!%p2541_p0), %s3727_s9  ;;  %s3443_s18 = smov (!%p2541_p0), %s3724_s0  }
  0x55   : > { %2462 = sbr.rel (%p2541_p0) target bundleno = 102 (0x66), region = 210  ;;  %s3447_s21 = smov (!%p2541_p0), 0  }
  0x56   : > { %s3451_s22 = smov (!%p2541_p0), 0  }
  0x5c LB: >> { %v496_v36 = vld [vmem:[%s3445_s18] sm:$0xff]  ;;  %v498_v37 = vld [vmem:[%s3445_s18 + $0xc8] sm:$0xff]  ;;  %v500_v38 = vld [vmem:[%s3445_s18 + $0x190] sm:$0xff]  ;;  %s502_s20 = sadd.s32 1, %s3449_s21  ;;  %s490_s22 = sadd.s32 1, %s3453_s22   ;;  %s3453_s22 = sphi %s3451_s22, %s490_s22   ;;  %s3449_s21 = sphi %s3447_s21, %s3448_s21   ;;  %s3445_s18 = sphi %s3443_s18, %s507_s18   ;;  %s3441_s23 = sphi %s5037_s23, %s508_s23  }
  0x5d   : >> { %497 = vst [vmem:[%s3441_s23] sm:$0xff] %v496_v36  ;;  %499 = vst [vmem:[%s3441_s23 + $0x60] sm:$0xff] %v498_v37  ;;  %p503_p1 = scmp.ge.s32.totalorder %s502_s20, %s3729_s8  ;;  %p489_p2 = scmp.ge.s32.totalorder %s490_s22, %s3729_s8 }
  0x5e   : >> { %501 = vst [vmem:[%s3441_s23 + $0xc0] sm:$0xff] %v500_v38 }
  0x5f   : >> { %s5128_s20 = smov (%p503_p1, %s502_s20), 0  ;;  %492 = sbr.rel (!%p489_p2) target bundleno = 92 (0x5c), region = 216 }
  0x60   : >> { %s2542_s14 = sshll.u32 %s5128_s20, 3  ;;  %s3448_s21 = smov %s5128_s20  }
  0x61   : >> { %s507_s18 = scalar_lea.vmem %s3724_s0, %s2542_s14   ;;  %s508_s23 = scalar_lea.vmem %s3727_s9, %s2542_s14 [#allocation2]  }
  0x66 PF: > { %p2544_p3 = scmp.ge.s32.totalorder %s3421_s30, 1  ;;  %p513_p4 = scmp.lt.s32.totalorder %s3421_s30, 7 }
  0x68   : > { %p514_p5 = pnand %p2544_p3, %p513_p4 }
  0x69   : > { %s520_s15 = sand.u32 (!%p514_p5), 1, %s3397_s24   ;;  %v2981_v39 = vld [vmem:[%s5018_s1 + $0x4] ss:$8 sps:$4 sm:$0xff] (!%p514_p5)   ;;  %v2983_v40 = vld [vmem:[%s5018_s1] ss:$8 sps:$4 sm:$0xff] (!%p514_p5)   ;;  %v3487_v51 = vmov (!%p514_p5), 0  }
  0x6a   : > { %517 = sbr.rel (%p514_p5) target bundleno = 1126 (0x466), region = 96  ;;  %819 = vmatprep.subr.bf16.mxu0 (!%p514_p5), %v2981_v39  ;;  %v2984_v41 = vld [vmem:[%s5018_s1 + $0x14] ss:$8 sps:$4 sm:$0xff] (!%p514_p5)   ;;  %v2986_v42 = vld [vmem:[%s5018_s1 + $0x10] ss:$8 sps:$4 sm:$0xff] (!%p514_p5)   ;;  %851 = vmatprep.mubr.bf16.mxu0 (!%p514_p5), %v3487_v51  ;;  %s3488_s20 = smov (!%p514_p5), 24  }
  0x6b   : > { %s2725_s11 = smul.u32 (!%p514_p5), 288, %s520_s15  ;;  %820 = vmatpush1.bf16.msra.mxu0 (!%p514_p5), %v2983_v40  ;;  %v2987_v43 = vld [vmem:[%s5018_s1 + $0x24] ss:$8 sps:$4 sm:$0xff] (!%p514_p5)   ;;  %v2989_v56 = vld [vmem:[%s5018_s1 + $0x20] ss:$8 sps:$4 sm:$0xff] (!%p514_p5)   ;;  %s3489_s19 = smov (!%p514_p5), 48  }
  0x6c   : > { %821 = vmatprep.subr.bf16.mxu0 (!%p514_p5), %v2984_v41  ;;  %v2990_v4 = vld [vmem:[%s5018_s1 + $0x34] ss:$8 sps:$4 sm:$0xff] (!%p514_p5)   ;;  %v2992_v5 = vld [vmem:[%s5018_s1 + $0x30] ss:$8 sps:$4 sm:$0xff] (!%p514_p5)   ;;  %v735_v8 = vld [vmem:[%s5018_s1 + $0x40] sm:$0xff] (!%p514_p5)  ;;  %vm812_vm0 = vcmask (!%p514_p5), 1043456  }
  0x6d   : > { %s3763_s22 = scalar_lea.vmem (!%p514_p5), [#allocation2], %s2725_s11  ;;  %v2578_v12 = vcombine.high (!%p514_p5), %v735_v8, %v735_v8  ;;  %v2577_v13 = vcombine.low (!%p514_p5), %v735_v8, %v735_v8  ;;  %v2995_v24 = vld [vmem:[%s5020_s3 + $0x4] ss:$8 sps:$4 sm:$0xff] (!%p514_p5)   ;;  %v2997_v25 = vld [vmem:[%s5020_s3] ss:$8 sps:$4 sm:$0xff] (!%p514_p5)   ;;  %vm695_vm1 = vcmask (!%p514_p5), 195584  }
  0x6e   : > { %v2545_v44 = vld [vmem:[%s3763_s22 + $0x60] sm:$0xff] (!%p514_p5)  ;;  %v2546_v45 = vld [vmem:[%s3763_s22 + $0x68] sm:$0xff] (!%p514_p5)  ;;  %v2547_v49 = vld [vmem:[%s3763_s22 + $0x70] sm:$0xff] (!%p514_p5)  ;;  %1440 = vmatprep.subr.bf16.mxu1 (!%p514_p5), %v2995_v24  ;;  %vm708_vm2 = vcmask (!%p514_p5), 392192   ;;  %vm793_vm3 = vcmask (!%p514_p5), 588800   ;;  %s2726_s11 = smul.u32 (!%p514_p5), 96, %s520_s15 }
  0x6f   : > { %v2557_v46 = vld [vmem:[%s3763_s22 + $0xc0] sm:$0xff] (!%p514_p5)  ;;  %v2921_v47 = vpack.i.bf16 (!%p514_p5), %v2546_v45, %v2545_v44  ;;  %v2558_v48 = vld [vmem:[%s3763_s22 + $0xc8] sm:$0xff] (!%p514_p5)  ;;  %v2548_v50 = vld [vmem:[%s3763_s22 + $0x78] sm:$0xff] (!%p514_p5)  ;;  %822 = vmatpush1.bf16.msra.mxu0 (!%p514_p5), %v2986_v42  ;;  %v814_v15 = vsel (!%p514_p5), %vm812_vm0, %v2577_v13, 0  ;;  %1441 = vmatpush1.bf16.msra.mxu1 (!%p514_p5), %v2997_v25 }
  0x70   : > { %v2931_v52 = vpack.i.bf16 (!%p514_p5), %v2548_v50, %v2547_v49  ;;  %v2559_v53 = vld [vmem:[%s3763_s22 + $0xd0] sm:$0xff] (!%p514_p5)  ;;  %v2560_v54 = vld [vmem:[%s3763_s22 + $0xd8] sm:$0xff] (!%p514_p5)  ;;  %v2926_v55 = vpack.i.bf16 (!%p514_p5), %v2558_v48, %v2557_v46  ;;  %v2549_v58 = vld [vmem:[%s3763_s22 + $0x80] sm:$0xff] (!%p514_p5)  ;;  %823 = vmatprep.subr.bf16.mxu0 (!%p514_p5), %v2987_v43  ;;  %s4867_s24 = scalar_lea.vmem (!%p514_p5), [#allocation3], %s2726_s11  }
  0x71   : > { %2922 = vrot.lane.b32.xlu0 %v2921_v47, %s3488_s20  ;;  %v2936_v57 = vpack.i.bf16 %v2560_v54, %v2559_v53  ;;  %v2550_v59 = vld [vmem:[%s3763_s22 + $0x88] sm:$0xff]  ;;  %v2561_v60 = vld [vmem:[%s3763_s22 + $0xe0] sm:$0xff]  ;;  %v2551_v63 = vld [vmem:[%s3763_s22 + $0x90] sm:$0xff]  ;;  %s2204_s15 = smul.u32 (%p3578_p6), 12, %s3405_s26 }
  0x72   : > { %2932 = vrot.lane.b32.xlu1 %v2931_v52, %s3488_s20  ;;  %v2562_v61 = vld [vmem:[%s3763_s22 + $0xe8] sm:$0xff]  ;;  %v2941_v62 = vpack.i.bf16 %v2550_v59, %v2549_v58  ;;  %v2552_v0 = vld [vmem:[%s3763_s22 + $0x98] sm:$0xff]  ;;  %v2563_v2 = vld [vmem:[%s3763_s22 + $0xf0] sm:$0xff]  ;;  %s2727_s13 = smul.u32 (%p3578_p6), 25, %s3409_s27 }
  0x73   : > { %824 = vmatpush1.bf16.msra.mxu0 %v2989_v56  ;;  %v2946_v1 = vpack.i.bf16 %v2562_v61, %v2561_v60  ;;  %v2564_v3 = vld [vmem:[%s3763_s22 + $0xf8] sm:$0xff]  ;;  %v2553_v6 = vld [vmem:[%s3763_s22 + $0xa0] sm:$0xff]  ;;  %v2554_v7 = vld [vmem:[%s3763_s22 + $0xa8] sm:$0xff]  ;;  %v2951_v9 = vpack.i.bf16 %v2552_v0, %v2551_v63  ;;  %s2205_s0 = ssub.s32 (%p3578_p6), 25, %s2204_s15 }
  0x74   : > { %v2565_v10 = vld [vmem:[%s3763_s22 + $0x100] sm:$0xff]  ;;  %v2566_v11 = vld [vmem:[%s3763_s22 + $0x108] sm:$0xff]  ;;  %825 = vmatprep.subr.bf16.mxu0 %v2990_v4  ;;  %v2956_v14 = vpack.i.bf16 %v2564_v3, %v2563_v2  ;;  %v2555_v16 = vld [vmem:[%s3763_s22 + $0xb0] sm:$0xff]  ;;  %v2961_v18 = vpack.i.bf16 %v2554_v7, %v2553_v6  ;;  %p2206_p7 = scmp.lt.s32.totalorder (%p3578_p6), %s2205_s0, 12 }
  0x75   : > { %2927 = vrot.lane.b32.xlu0 %v2926_v55, %s3489_s19  ;;  %v2556_v17 = vld [vmem:[%s3763_s22 + $0xb8] sm:$0xff]  ;;  %v2567_v19 = vld [vmem:[%s3763_s22 + $0x110] sm:$0xff]  ;;  %v2966_v21 = vpack.i.bf16 %v2566_v11, %v2565_v10  ;;  %v3001_v28 = vld [vmem:[%s5020_s3 + $0x24] ss:$8 sps:$4 sm:$0xff]  }
  0x76   : > { %2937 = vrot.lane.b32.xlu1 %v2936_v57, %s3489_s19  ;;  %v2568_v20 = vld [vmem:[%s3763_s22 + $0x118] sm:$0xff]  ;;  %v2971_v22 = vpack.i.bf16 %v2556_v17, %v2555_v16  ;;  %v3003_v29 = vld [vmem:[%s5020_s3 + $0x20] ss:$8 sps:$4 sm:$0xff]   ;;  %v3007_v32 = vld [vmem:[%s5020_s3 + $0x44] ss:$8 sps:$4 sm:$0xff]  }
  0x77   : > { %826 = vmatpush1.bf16.msra.mxu0 %v2992_v5  ;;  %v2976_v23 = vpack.i.bf16 %v2568_v20, %v2567_v19  ;;  %v2998_v26 = vld [vmem:[%s5020_s3 + $0x14] ss:$8 sps:$4 sm:$0xff]   ;;  %v3000_v27 = vld [vmem:[%s5020_s3 + $0x10] ss:$8 sps:$4 sm:$0xff]   ;;  %v3009_v33 = vld [vmem:[%s5020_s3 + $0x40] ss:$8 sps:$4 sm:$0xff]  }
  0x78   : > { %2579 = vmatprep.subr.msk.bf16.mxu0 %vm812_vm0, %v2578_v12  ;;  %1442 = vmatprep.subr.bf16.mxu1 %v2998_v26  ;;  %v3004_v30 = vld [vmem:[%s5020_s3 + $0x34] ss:$8 sps:$4 sm:$0xff]   ;;  %v3006_v31 = vld [vmem:[%s5020_s3 + $0x30] ss:$8 sps:$4 sm:$0xff]   ;;  %v3013_v36 = vld [vmem:[%s5020_s3 + $0x64] ss:$8 sps:$4 sm:$0xff]  }
  0x79   : > { %2942 = vrot.lane.b32.xlu0 %v2941_v62, %s3488_s20  ;;  %1443 = vmatpush1.bf16.msra.mxu1 %v3000_v27  ;;  %v3010_v34 = vld [vmem:[%s5020_s3 + $0x54] ss:$8 sps:$4 sm:$0xff]   ;;  %v3012_v35 = vld [vmem:[%s5020_s3 + $0x50] ss:$8 sps:$4 sm:$0xff]   ;;  %v561_v41 = vld [vmem:[%s3763_s22] sm:$0xff] }
  0x7a   : > { %2947 = vrot.lane.b32.xlu1 %v2946_v1, %s3489_s19  ;;  %1444 = vmatprep.subr.bf16.mxu1 %v3001_v28  ;;  %v562_v42 = vld [vmem:[%s3763_s22 + $0x8] sm:$0xff]  ;;  %v563_v54 = vld [vmem:[%s3763_s22 + $0x10] sm:$0xff]  ;;  %v564_v55 = vld [vmem:[%s3763_s22 + $0x18] sm:$0xff] }
  0x7b   : > { %828 = vmatpush1.bf16.msra.mxu0 %v814_v15  ;;  %v565_v3 = vld [vmem:[%s3763_s22 + $0x20] sm:$0xff]  ;;  %v566_v4 = vld [vmem:[%s3763_s22 + $0x28] sm:$0xff]  ;;  %v567_v16 = vld [vmem:[%s3763_s22 + $0x30] sm:$0xff] }
  0x7c   : > { %v568_v17 = vld [vmem:[%s3763_s22 + $0x38] sm:$0xff] }
  0x7d   : > { %2952 = vrot.lane.b32.xlu0 %v2951_v9, %s3488_s20  ;;  %1445 = vmatpush1.bf16.msra.mxu1 %v3003_v29  ;;  %v569_v29 = vld [vmem:[%s3763_s22 + $0x40] sm:$0xff] }
  0x7e   : > { %2957 = vrot.lane.b32.xlu1 %v2956_v14, %s3489_s19  ;;  %1446 = vmatprep.subr.bf16.mxu1 %v3004_v30  ;;  %v570_v30 = vld [vmem:[%s3763_s22 + $0x48] sm:$0xff] }
  0x81   : > { %2962 = vrot.lane.b32.xlu0 %v2961_v18, %s3488_s20  ;;  %1447 = vmatpush1.bf16.msra.mxu1 %v3006_v31 }
  0x82   : > { %2967 = vrot.lane.b32.xlu1 %v2966_v21, %s3489_s19  ;;  %1448 = vmatprep.subr.bf16.mxu1 %v3007_v32 }
  0x85   : > { %2972 = vrot.lane.b32.xlu0 %v2971_v22, %s3488_s20  ;;  %1449 = vmatpush1.bf16.msra.mxu1 %v3009_v33  ;;  %s2211_s20 = sadd.s32 (%p3578_p6), %s2727_s13, %s2204_s15 }
  0x86   : > { %2977 = vrot.lane.b32.xlu1 %v2976_v23, %s3489_s19  ;;  %1450 = vmatprep.subr.bf16.mxu1 %v3010_v34  ;;  %s2661_s19 = sshll.u32 (%p3578_p6), %s2211_s20, 3 }
  0x87   : > { %s4956_s10 = scalar_lea.vmem (%p3578_p6), %s5024_s7, %s2661_s19  }
  0x89   : > { %1451 = vmatpush1.bf16.msra.mxu1 %v3012_v35 }
  0x8a   : > { %1452 = vmatprep.subr.bf16.mxu1 %v3013_v36 }
  0xe3   : > { %v2923_v37 = vpop.permute.xlu0 %2922 }
  0xe4   : > { %v2933_v38 = vpop.permute.xlu1 %2932  ;;  %v2925_v39 = vunpack.i.h.bf16 %v2923_v37  ;;  %v2924_v40 = vunpack.i.l.bf16 %v2923_v37 }
  0xe5   : > { %v2935_v48 = vunpack.i.h.bf16 %v2933_v38  ;;  %v2934_v49 = vunpack.i.l.bf16 %v2933_v38 }
  0xe6   : > { %v696_v46 = vsel %vm695_vm1, %v561_v41, %v2924_v40  ;;  %v697_v47 = vsel %vm695_vm1, %v562_v42, %v2925_v39  ;;  %v571_v42 = vld [vmem:[%s3763_s22 + $0x50] sm:$0xff] }
  0xe7   : > { %v2928_v43 = vpop.permute.xlu0 %2927  ;;  %v698_v60 = vsel %vm695_vm1, %v563_v54, %v2934_v49  ;;  %v699_v61 = vsel %vm695_vm1, %v564_v55, %v2935_v48  ;;  %v3016_v54 = vld [vmem:[%s5020_s3 + $0x74] ss:$8 sps:$4 sm:$0xff]   ;;  %v3018_v55 = vld [vmem:[%s5020_s3 + $0x70] ss:$8 sps:$4 sm:$0xff]  }
  0xe8   : > { %v2930_v44 = vunpack.i.h.bf16 %v2928_v43  ;;  %v2929_v45 = vunpack.i.l.bf16 %v2928_v43  ;;  %v2938_v50 = vpop.permute.xlu1 %2937  ;;  %v572_v43 = vld [vmem:[%s3763_s22 + $0x58] sm:$0xff] }
  0xe9   : > { %v2940_v57 = vunpack.i.h.bf16 %v2938_v50  ;;  %v2939_v58 = vunpack.i.l.bf16 %v2938_v50 }
  0xea   : > { %v709_v52 = vsel %vm708_vm2, %v696_v46, %v2929_v45  ;;  %v710_v53 = vsel %vm708_vm2, %v697_v47, %v2930_v44 }
  0xeb   : > { %v721_v56 = vpack.c.bf16 %v710_v53, %v709_v52  ;;  %v2943_v59 = vpop.permute.xlu0 %2942  ;;  %v711_v1 = vsel %vm708_vm2, %v698_v60, %v2939_v58  ;;  %v712_v2 = vsel %vm708_vm2, %v699_v61, %v2940_v57  ;;  %v3015_v53 = vld [vmem:[%s5020_s3 + $0x60] ss:$8 sps:$4 sm:$0xff]   ;;  %v3022_v57 = vld [vmem:[%s5020_s3 + $0x94] ss:$8 sps:$4 sm:$0xff]   ;;  %v3024_v58 = vld [vmem:[%s5020_s3 + $0x90] ss:$8 sps:$4 sm:$0xff]  }
  0xec   : > { %v2945_v62 = vunpack.i.h.bf16 %v2943_v59  ;;  %v2944_v63 = vunpack.i.l.bf16 %v2943_v59  ;;  %v2948_v0 = vpop.permute.xlu1 %2947  ;;  %v722_v7 = vpack.c.bf16 %v712_v2, %v711_v1  ;;  %1453 = vmatpush1.bf16.msra.mxu1 %v3015_v53  ;;  %v3025_v59 = vld [vmem:[%s5020_s3 + $0xa4] ss:$8 sps:$4 sm:$0xff]   ;;  %v3027_v60 = vld [vmem:[%s5020_s3 + $0xa0] ss:$8 sps:$4 sm:$0xff]   ;;  %v3028_v61 = vld [vmem:[%s5020_s3 + $0xb4] ss:$8 sps:$4 sm:$0xff]  }
  0xed   : > { %2580 = vmatmul.mubr.msk.bf16.vlgmr.msra.gmra.mrb[0].mxu0 %vm793_vm3, %v721_v56  ;;  %v2950_v5 = vunpack.i.h.bf16 %v2948_v0  ;;  %v2949_v6 = vunpack.i.l.bf16 %v2948_v0  ;;  %1454 = vmatprep.subr.bf16.mxu1 %v3016_v54  ;;  %v3021_v56 = vld [vmem:[%s5020_s3 + $0x80] ss:$8 sps:$4 sm:$0xff]   ;;  %v3034_v1 = vld [vmem:[%s5020_s3 + $0xd4] ss:$8 sps:$4 sm:$0xff]   ;;  %v3036_v2 = vld [vmem:[%s5020_s3 + $0xd0] ss:$8 sps:$4 sm:$0xff]  }
  0xee   : > { %861 = vmatprep.mubr.bf16.mxu0 %v3487_v51  ;;  %v700_v8 = vsel %vm695_vm1, %v565_v3, %v2944_v63  ;;  %v701_v9 = vsel %vm695_vm1, %v566_v4, %v2945_v62  ;;  %v3030_v62 = vld [vmem:[%s5020_s3 + $0xb0] ss:$8 sps:$4 sm:$0xff]   ;;  %v3031_v63 = vld [vmem:[%s5020_s3 + $0xc4] ss:$8 sps:$4 sm:$0xff]   ;;  %v3033_v0 = vld [vmem:[%s5020_s3 + $0xc0] ss:$8 sps:$4 sm:$0xff]  }
  0xef   : > { %v2953_v10 = vpop.permute.xlu0 %2952  ;;  %v713_v11 = vsel %vm708_vm2, %v700_v8, %v2949_v6  ;;  %v714_v12 = vsel %vm708_vm2, %v701_v9, %v2950_v5  ;;  %v3037_v3 = vld [vmem:[%s5020_s3 + $0xe4] ss:$8 sps:$4 sm:$0xff]   ;;  %v3039_v4 = vld [vmem:[%s5020_s3 + $0xe0] ss:$8 sps:$4 sm:$0xff]   ;;  %v3040_v5 = vld [vmem:[%s5020_s3 + $0xf4] ss:$8 sps:$4 sm:$0xff]  }
  0xf0   : > { %v2955_v13 = vunpack.i.h.bf16 %v2953_v10  ;;  %v2954_v14 = vunpack.i.l.bf16 %v2953_v10  ;;  %v2958_v15 = vpop.permute.xlu1 %2957  ;;  %v723_v18 = vpack.c.bf16 %v714_v12, %v713_v11  ;;  %1455 = vmatpush1.bf16.msra.mxu1 %v3018_v55  ;;  %v3042_v6 = vld [vmem:[%s5020_s3 + $0xf0] ss:$8 sps:$4 sm:$0xff]   ;;  %v3044_v8 = vld [vmem:[%s5022_s5] sm:$0xff]   ;;  %v3045_v9 = vld [vmem:[%s5022_s5 + $0x48] sm:$0xff]   ;;  %v738_v11 = vlaneseq }
  0xf1   : > { %v2960_v19 = vunpack.i.h.bf16 %v2958_v15  ;;  %v2959_v20 = vunpack.i.l.bf16 %v2958_v15  ;;  %v3046_v10 = vld [vmem:[%s5022_s5 + $0x8] sm:$0xff]  }
  0xf2   : > { %v702_v21 = vsel %vm695_vm1, %v567_v16, %v2954_v14  ;;  %v703_v22 = vsel %vm695_vm1, %v568_v17, %v2955_v13  ;;  %v3970_v12 = vshrl.u32 %v738_v11, 7  ;;  %v736_v14 = vld [vmem:[%s5019_s2] sm:$0x3] }
  0xf3   : > { %v2963_v23 = vpop.permute.xlu0 %2962  ;;  %v715_v24 = vsel %vm708_vm2, %v702_v21, %v2959_v20  ;;  %v716_v25 = vsel %vm708_vm2, %v703_v22, %v2960_v19 }
  0xf4   : > { %v2965_v26 = vunpack.i.h.bf16 %v2963_v23  ;;  %v2964_v27 = vunpack.i.l.bf16 %v2963_v23  ;;  %v2968_v28 = vpop.permute.xlu1 %2967  ;;  %v724_v31 = vpack.c.bf16 %v716_v25, %v715_v24  ;;  %v740_v13 = vsub.s32 0, %v3970_v12 }
  0xf5   : > { %2581 = vmatmul.mubr.msk.bf16.gmra.mrb[4].mxu0 %vm793_vm3, %v722_v7  ;;  %v2970_v32 = vunpack.i.h.bf16 %v2968_v28  ;;  %v2969_v33 = vunpack.i.l.bf16 %v2968_v28  ;;  %v3043_v7 = vld [vmem:[%s5022_s5 + $0x40] sm:$0xff]   ;;  %v744_v15 = vsub.s32 1, %v3970_v12 }
  0xf6   : > { %871 = vmatprep.mubr.bf16.mxu0 %v3487_v51  ;;  %v704_v34 = vsel %vm695_vm1, %v569_v29, %v2964_v27  ;;  %v705_v35 = vsel %vm695_vm1, %v570_v30, %v2965_v26  ;;  %2671 = vmatprep.subr.bf16.mxu0 %v3043_v7  ;;  %v3979_v16 = vrot.slane %v736_v14, %v740_v13 }
  0xf7   : > { %v2973_v36 = vpop.permute.xlu0 %2972  ;;  %v717_v37 = vsel %vm708_vm2, %v704_v34, %v2969_v33  ;;  %v718_v38 = vsel %vm708_vm2, %v705_v35, %v2970_v32  ;;  %2672 = vmatpush3.bf16.msra.mxu0 %v3044_v8  ;;  %v3983_v17 = vrot.slane %v736_v14, %v744_v15 }
  0xf8   : > { %v2975_v39 = vunpack.i.h.bf16 %v2973_v36  ;;  %v2974_v40 = vunpack.i.l.bf16 %v2973_v36  ;;  %v2978_v41 = vpop.permute.xlu1 %2977  ;;  %v725_v44 = vpack.c.bf16 %v718_v38, %v717_v37  ;;  %2673 = vmatprep.subr.bf16.mxu0 %v3045_v9 }
  0xf9   : > { %v2980_v45 = vunpack.i.h.bf16 %v2978_v41  ;;  %v2979_v46 = vunpack.i.l.bf16 %v2978_v41 }
  0xfa   : > { %v706_v47 = vsel %vm695_vm1, %v571_v42, %v2974_v40  ;;  %v707_v48 = vsel %vm695_vm1, %v572_v43, %v2975_v39 }
  0xfb   : > { %v719_v49 = vsel %vm708_vm2, %v706_v47, %v2979_v46  ;;  %v720_v50 = vsel %vm708_vm2, %v707_v48, %v2980_v45  ;;  %2674 = vmatpush3.bf16.msra.mxu0 %v3046_v10 }
  0xfc   : > { %v726_v52 = vpack.c.bf16 %v720_v50, %v719_v49 }
  0xfd   : > { %2582 = vmatmul.mubr.msk.bf16.gmra.mrb[8].mxu0 %vm793_vm3, %v723_v18 }
  0xfe   : > { %881 = vmatprep.mubr.bf16.mxu0 %v3487_v51 }
 0x105   : > { %2583 = vmatmul.mubr.msk.bf16.gmra.mrb[12].mxu0 %vm793_vm3, %v724_v31 }
 0x106   : > { %891 = vmatprep.mubr.bf16.mxu0 %v3487_v51 }
 0x10d   : > { %2584 = vmatmul.mubr.msk.bf16.gmra.mrb[16].mxu0 %vm793_vm3, %v725_v44 }
 0x10e   : > { %901 = vmatprep.mubr.bf16.mxu0 %v3487_v51  ;;  %v3019_v51 = vld [vmem:[%s5020_s3 + $0x84] ss:$8 sps:$4 sm:$0xff]  }
 0x10f   : > { %1456 = vmatprep.subr.bf16.mxu1 %v3019_v51 }
 0x110   : > { %1457 = vmatpush1.bf16.msra.mxu1 %v3021_v56 }
 0x111   : > { %1458 = vmatprep.subr.bf16.mxu1 %v3022_v57 }
 0x114   : > { %1459 = vmatpush1.bf16.msra.mxu1 %v3024_v58 }
 0x115   : > { %2585 = vmatmul.mubr.msk.bf16.gmra.mrb[20].mxu0 %vm793_vm3, %v726_v52  ;;  %1460 = vmatprep.subr.bf16.mxu1 %v3025_v59 }
 0x118   : > { %1461 = vmatpush1.bf16.msra.mxu1 %v3027_v60 }
 0x119   : > { %1462 = vmatprep.subr.bf16.mxu1 %v3028_v61 }
 0x11c   : > { %1463 = vmatpush1.bf16.msra.mxu1 %v3030_v62 }
 0x11d   : > { %1464 = vmatprep.subr.bf16.mxu1 %v3031_v63 }
 0x120   : > { %1465 = vmatpush1.bf16.msra.mxu1 %v3033_v0 }
 0x121   : > { %1466 = vmatprep.subr.bf16.mxu1 %v3034_v1 }
 0x124   : > { %1467 = vmatpush1.bf16.msra.mxu1 %v3036_v2 }
 0x125   : > { %1468 = vmatprep.subr.bf16.mxu1 %v3037_v3 }
 0x128   : > { %1469 = vmatpush1.bf16.msra.mxu1 %v3039_v4 }
 0x129   : > { %1470 = vmatprep.subr.bf16.mxu1 %v3040_v5 }
 0x12c   : > { %1471 = vmatpush1.bf16.msra.mxu1 %v3042_v6 }
 0x1c0   : > { %v853_v18 = vpop.f32.mrb[0].mxu0 }
 0x1c1   : > { %v3986_v19 = vadd.f32 %v853_v18, %v3979_v16  ;;  %v855_v20 = vpop.f32.mrb[1].mxu0 }
 0x1c2   : > { %v3989_v21 = vadd.f32 %v855_v20, %v3983_v17  ;;  %v857_v22 = vpop.f32.mrb[2].mxu0 }
 0x1c3   : > { %v936_v23 = vmul.f32 1.442695, %v3986_v19  ;;  %v3993_v24 = vadd.f32 %v857_v22, %v3979_v16  ;;  %v859_v25 = vpop.f32.mrb[3].mxu0  ;;  %vm912_vm7 = vcmp.gt.f32.partialorder %v3986_v19, 20.0 }
 0x1c4   : > { %v938_v26 = vmul.f32 1.442695, %v3989_v21  ;;  %v3997_v27 = vadd.f32 %v859_v25, %v3983_v17  ;;  %vm913_vm6 = vcmp.gt.f32.partialorder %v3989_v21, 20.0 }
 0x1c5   : > { %3059 = vpow2.f32 %v936_v23  ;;  %v940_v29 = vmul.f32 1.442695, %v3993_v24  ;;  %vm914_vm8 = vcmp.gt.f32.partialorder %v3993_v24, 20.0 }
 0x1c6   : > { %3061 = vpow2.f32 %v938_v26  ;;  %v942_v28 = vmul.f32 1.442695, %v3997_v27  ;;  %vm915_vm9 = vcmp.gt.f32.partialorder %v3997_v27, 20.0 }
 0x1c8   : > { %v863_v30 = vpop.f32.mrb[4].mxu0  ;;  %3063 = vpow2.f32 %v942_v28 }
 0x1c9   : > { %v865_v31 = vpop.f32.mrb[5].mxu0  ;;  %3065 = vpow2.f32 %v940_v29  ;;  %v4005_v35 = vadd.f32 %v863_v30, %v3979_v16 }
 0x1ca   : > { %v4002_v32 = vadd.f32 %v865_v31, %v3983_v17  ;;  %v867_v33 = vpop.f32.mrb[6].mxu0 }
 0x1cb   : > { %v869_v34 = vpop.f32.mrb[7].mxu0  ;;  %v4009_v37 = vadd.f32 %v867_v33, %v3979_v16  ;;  %v944_v43 = vmul.f32 1.442695, %v4005_v35  ;;  %vm916_vm0 = vcmp.gt.f32.partialorder %v4005_v35, 20.0 }
 0x1cc   : > { %v946_v36 = vmul.f32 1.442695, %v4002_v32  ;;  %v4014_v39 = vadd.f32 %v869_v34, %v3983_v17  ;;  %vm917_vm12 = vcmp.gt.f32.partialorder %v4002_v32, 20.0 }
 0x1cd   : > { %v948_v46 = vmul.f32 1.442695, %v4009_v37  ;;  %vm918_vm1 = vcmp.gt.f32.partialorder %v4009_v37, 20.0 }
 0x1ce   : > { %3067 = vpow2.f32 %v946_v36  ;;  %v950_v48 = vmul.f32 1.442695, %v4014_v39  ;;  %vm919_vm14 = vcmp.gt.f32.partialorder %v4014_v39, 20.0 }
 0x1cf   : > { %v4011_v38 = vpop.eup %3059 }
 0x1d0   : > { %v4016_v40 = vpop.eup %3061  ;;  %v873_v41 = vpop.f32.mrb[8].mxu0  ;;  %v984_v42 = vadd.f32 1.0, %v4011_v38  ;;  %v990_v58 = vand.u32 2147483647, %v4011_v38  ;;  %v987_v62 = vmul.f32 -0.5, %v4011_v38 }
 0x1d1   : > { %v875_v44 = vpop.f32.mrb[9].mxu0  ;;  %v993_v45 = vadd.f32 1.0, %v4016_v40  ;;  %v4024_v49 = vadd.f32 %v873_v41, %v3979_v16  ;;  %v996_v61 = vmul.f32 -0.5, %v4016_v40  ;;  %v999_v3 = vand.u32 2147483647, %v4016_v40 }
 0x1d2   : > { %v877_v47 = vpop.f32.mrb[10].mxu0  ;;  %3069 = vlog2.f32 %v984_v42  ;;  %v4026_v52 = vpop.eup %3063  ;;  %v4029_v53 = vadd.f32 %v875_v44, %v3983_v17  ;;  %v988_v22 = vadd.f32 1.0, %v987_v62  ;;  %vm4067_vm5 = vcmp.lt.f32.partialorder %v990_v58, 0.0004427343 }
 0x1d3   : > { %v879_v50 = vpop.f32.mrb[11].mxu0  ;;  %3071 = vlog2.f32 %v993_v45  ;;  %v4031_v54 = vpop.eup %3065  ;;  %v4034_v55 = vadd.f32 %v877_v47, %v3979_v16  ;;  %v952_v56 = vmul.f32 1.442695, %v4024_v49  ;;  %v1011_v57 = vadd.f32 1.0, %v4026_v52 }
 0x1d4   : > { %3073 = vpow2.f32 %v944_v43  ;;  %v4037_v51 = vadd.f32 %v879_v50, %v3983_v17  ;;  %v954_v59 = vmul.f32 1.442695, %v4029_v53  ;;  %v1002_v63 = vadd.f32 1.0, %v4031_v54 }
 0x1d5   : > { %3075 = vpow2.f32 %v948_v46  ;;  %v956_v0 = vmul.f32 1.442695, %v4034_v55  ;;  %v1014_v10 = vmul.f32 -0.5, %v4026_v52  ;;  %v1005_v14 = vmul.f32 -0.5, %v4031_v54 }
 0x1d6   : > { %3077 = vpow2.f32 %v950_v48  ;;  %v958_v4 = vmul.f32 1.442695, %v4037_v51  ;;  %v997_v25 = vadd.f32 1.0, %v996_v61  ;;  %vm4063_vm4 = vcmp.lt.f32.partialorder %v999_v3, 0.0004427343 }
 0x1d7   : > { %3079 = vlog2.f32 %v1011_v57  ;;  %v1017_v31 = vand.u32 2147483647, %v4026_v52  ;;  %v1015_v36 = vadd.f32 1.0, %v1014_v10  ;;  %v1006_v41 = vadd.f32 1.0, %v1005_v14 }
 0x1d8   : > { %v883_v60 = vpop.f32.mrb[12].mxu0  ;;  %3081 = vlog2.f32 %v1002_v63  ;;  %v4055_v7 = vpop.eup %3067  ;;  %v998_v50 = vmul.f32 %v4016_v40, %v997_v25  ;;  %v1008_v57 = vand.u32 2147483647, %v4031_v54  ;;  %vm921_vm2 = vcmp.gt.f32.partialorder %v4029_v53, 20.0 }
 0x1d9   : > { %v4048_v1 = vadd.f32 %v883_v60, %v3979_v16  ;;  %v885_v2 = vpop.f32.mrb[13].mxu0  ;;  %3083 = vpow2.f32 %v952_v56  ;;  %v1029_v42 = vadd.f32 1.0, %v4055_v7  ;;  %v989_v56 = vmul.f32 %v4011_v38, %v988_v22 }
 0x1da   : > { %v4053_v5 = vadd.f32 %v885_v2, %v3983_v17  ;;  %v887_v6 = vpop.f32.mrb[14].mxu0  ;;  %3085 = vpow2.f32 %v954_v59  ;;  %vm4095_vm10 = vcmp.lt.f32.partialorder %v1017_v31, 0.0004427343  ;;  %v1016_v63 = vmul.f32 %v4026_v52, %v1015_v36 }
 0x1db   : > { %v4058_v8 = vadd.f32 %v887_v6, %v3979_v16  ;;  %v889_v9 = vpop.f32.mrb[15].mxu0  ;;  %v960_v20 = vmul.f32 1.442695, %v4048_v1  ;;  %3087 = vpow2.f32 %v956_v0  ;;  %v1007_v0 = vmul.f32 %v4031_v54, %v1006_v41 }
 0x1dc   : > { %v3070_v18 = vpop.eup %3069  ;;  %3089 = vpow2.f32 %v958_v4  ;;  %v962_v29 = vmul.f32 1.442695, %v4053_v5  ;;  %v4073_v30 = vadd.f32 %v889_v9, %v3983_v17  ;;  %vm4116_vm11 = vcmp.lt.f32.partialorder %v1008_v57, 0.0004427343 }
 0x1dd   : > { %v3072_v23 = vpop.eup %3071  ;;  %v964_v34 = vmul.f32 1.442695, %v4058_v8  ;;  %3091 = vpow2.f32 %v960_v20  ;;  %v986_v46 = vmul.f32 0.6931472, %v3070_v18  ;;  %v1032_v25 = vmul.f32 -0.5, %v4055_v7 }
 0x1de   : > { %v4077_v33 = vpop.eup %3073  ;;  %v995_v45 = vmul.f32 0.6931472, %v3072_v23  ;;  %3093 = vlog2.f32 %v1029_v42  ;;  %v966_v58 = vmul.f32 1.442695, %v4073_v30  ;;  %vm923_vm3 = vcmp.gt.f32.partialorder %v4037_v51, 20.0 }
 0x1df   : > { %v4083_v43 = vpop.eup %3075  ;;  %3095 = vpow2.f32 %v962_v29  ;;  %v992_v9 = vsel %vm4067_vm5, %v989_v56, %v986_v46 }
 0x1e0   : > { %v893_v44 = vpop.f32.mrb[16].mxu0  ;;  %v4086_v47 = vpop.eup %3077  ;;  %3097 = vpow2.f32 %v964_v34  ;;  %v1001_v4 = vsel %vm4063_vm4, %v998_v50, %v995_v45 }
 0x1e1   : > { %v895_v48 = vpop.f32.mrb[17].mxu0  ;;  %v4093_v59 = vadd.f32 %v893_v44, %v3979_v16  ;;  %v3080_v62 = vpop.eup %3079  ;;  %v1047_v54 = vadd.f32 1.0, %v4086_v47  ;;  %3099 = vpow2.f32 %v966_v58  ;;  %v1201_v29 = vsel %vm913_vm6, %v3989_v21, %v1001_v4 }
 0x1e2   : > { %v897_v60 = vpop.f32.mrb[18].mxu0  ;;  %v4100_v40 = vadd.f32 %v895_v48, %v3983_v17  ;;  %v3082_v2 = vpop.eup %3081  ;;  %v1013_v6 = vmul.f32 0.6931472, %v3080_v62  ;;  %v1200_v44 = vsel %vm912_vm7, %v3986_v19, %v992_v9  ;;  %v1050_v58 = vmul.f32 -0.5, %v4086_v47 }
 0x1e3   : > { %v899_v38 = vpop.f32.mrb[19].mxu0  ;;  %v4105_v3 = vadd.f32 %v897_v60, %v3979_v16  ;;  %v4111_v10 = vpop.eup %3083  ;;  %v1004_v18 = vmul.f32 0.6931472, %v3082_v2  ;;  %v968_v22 = vmul.f32 1.442695, %v4093_v59  ;;  %3101 = vlog2.f32 %v1047_v54 }
 0x1e4   : > { %v4114_v14 = vadd.f32 %v899_v38, %v3983_v17  ;;  %v4121_v20 = vpop.eup %3085  ;;  %v1019_v23 = vsel %vm4095_vm10, %v1016_v63, %v1013_v6  ;;  %v970_v28 = vmul.f32 1.442695, %v4100_v40  ;;  %v1033_v38 = vadd.f32 1.0, %v1032_v25 }
 0x1e5   : > { %v4127_v26 = vpop.eup %3087  ;;  %v1203_v31 = vsel %vm915_vm9, %v3997_v27, %v1019_v23  ;;  %v1010_v34 = vsel %vm4116_vm11, %v1007_v0, %v1004_v18  ;;  %v972_v41 = vmul.f32 1.442695, %v4105_v3  ;;  %3103 = vpow2.f32 %v968_v22 }
 0x1e6   : > { %v4138_v36 = vpop.eup %3089  ;;  %v1225_v42 = vpack.c.bf16 %v1203_v31, %v1201_v29  ;;  %v1202_v21 = vsel %vm914_vm8, %v3993_v24, %v1010_v34  ;;  %v974_v46 = vmul.f32 1.442695, %v4114_v14  ;;  %3105 = vpow2.f32 %v970_v28 }
 0x1e7   : > { %v1224_v27 = vpack.c.bf16 %v1202_v21, %v1200_v44  ;;  %v4151_v56 = vpop.eup %3091  ;;  %3107 = vpow2.f32 %v972_v41  ;;  %v1035_v2 = vand.u32 2147483647, %v4055_v7  ;;  %v1023_v4 = vmul.f32 -0.5, %v4077_v33 }
 0x1e8   : > { %v903_v45 = vpop.f32.mrb[20].mxu0  ;;  %1472 = vmatprep.mubr.bf16.mxu1 %v1225_v42  ;;  %v3094_v24 = vpop.eup %3093  ;;  %3109 = vpow2.f32 %v974_v46  ;;  %v1051_v52 = vadd.f32 1.0, %v1050_v58  ;;  %v1034_v22 = vmul.f32 %v4055_v7, %v1033_v38  ;;  %v1053_v23 = vand.u32 2147483647, %v4086_v47 }
 0x1e9   : > { %v4149_v48 = vadd.f32 %v903_v45, %v3979_v16  ;;  %v905_v50 = vpop.f32.mrb[21].mxu0  ;;  %1473 = vmatmul.mubr.bf16.vlgmr.msra.gmra.mrb[0].mxu1 %v1224_v27  ;;  %v4161_v63 = vpop.eup %3095  ;;  %v1031_v18 = vmul.f32 0.6931472, %v3094_v24  ;;  %vm4178_vm13 = vcmp.lt.f32.partialorder %v1035_v2, 0.0004427343  ;;  %v1024_v29 = vadd.f32 1.0, %v1023_v4 }
 0x1ea   : > { %v4154_v57 = vadd.f32 %v905_v50, %v3983_v17  ;;  %v907_v19 = vpop.f32.mrb[22].mxu0  ;;  %v4166_v6 = vpop.eup %3097  ;;  %v1038_v31 = vadd.f32 1.0, %v4083_v43  ;;  %v1065_v7 = vadd.f32 1.0, %v4121_v20  ;;  %v1052_v34 = vmul.f32 %v4086_v47, %v1051_v52 }
 0x1eb   : > { %v976_v60 = vmul.f32 1.442695, %v4149_v48  ;;  %v4159_v61 = vadd.f32 %v907_v19, %v3979_v16  ;;  %v909_v62 = vpop.f32.mrb[23].mxu0  ;;  %v1020_v16 = vadd.f32 1.0, %v4077_v33  ;;  %v4176_v25 = vpop.eup %3099  ;;  %v1041_v41 = vmul.f32 -0.5, %v4083_v43 }
 0x1ec   : > { %v978_v0 = vmul.f32 1.442695, %v4154_v57  ;;  %v4172_v54 = vadd.f32 %v909_v62, %v3983_v17  ;;  %v1037_v17 = vsel %vm4178_vm13, %v1034_v22, %v1031_v18  ;;  %v1068_v42 = vmul.f32 -0.5, %v4121_v20 }
 0x1ed   : > { %v980_v9 = vmul.f32 1.442695, %v4159_v61  ;;  %3111 = vpow2.f32 %v976_v60  ;;  %v3102_v44 = vpop.eup %3101  ;;  %vm4191_vm15 = vcmp.lt.f32.partialorder %v1053_v23, 0.0004427343  ;;  %v1083_v46 = vadd.f32 1.0, %v4138_v36 }
 0x1ee   : > { %3113 = vpow2.f32 %v978_v0  ;;  %v982_v21 = vmul.f32 1.442695, %v4172_v54  ;;  %v1049_v50 = vmul.f32 0.6931472, %v3102_v44  ;;  %v1205_v47 = vsel %vm917_vm12, %v4002_v32, %v1037_v17 }
 0x1ef   : > { %3115 = vpow2.f32 %v980_v9  ;;  %v4196_v27 = vpop.eup %3103  ;;  %v1025_v19 = vmul.f32 %v4077_v33, %v1024_v29  ;;  %v1086_v58 = vmul.f32 -0.5, %v4138_v36  ;;  %v1026_v60 = vand.u32 2147483647, %v4077_v33 }
 0x1f0   : > { %3117 = vlog2.f32 %v1020_v16  ;;  %v4203_v24 = vpop.eup %3105  ;;  %v1044_v62 = vand.u32 2147483647, %v4083_v43  ;;  %v1056_v38 = vadd.f32 1.0, %v4111_v10  ;;  %v1055_v32 = vsel %vm4191_vm15, %v1052_v34, %v1049_v50 }
 0x1f1   : > { %3119 = vlog2.f32 %v1038_v31  ;;  %v4208_v0 = vpop.eup %3107  ;;  %v1042_v2 = vadd.f32 1.0, %v1041_v41  ;;  %v1069_v4 = vadd.f32 1.0, %v1068_v42  ;;  %v1071_v9 = vand.u32 2147483647, %v4121_v20 }
 0x1f2   : > { %3121 = vlog2.f32 %v1065_v7  ;;  %v4214_v18 = vpop.eup %3109  ;;  %v1207_v33 = vsel %vm919_vm14, %v4014_v39, %v1055_v32  ;;  %v1059_v16 = vmul.f32 -0.5, %v4111_v10  ;;  %v1074_v52 = vadd.f32 1.0, %v4127_v26 }
 0x1f3   : > { %3123 = vlog2.f32 %v1083_v46  ;;  %v1227_v23 = vpack.c.bf16 %v1207_v33, %v1205_v47  ;;  %v1087_v28 = vadd.f32 1.0, %v1086_v58  ;;  %v1089_v29 = vand.u32 2147483647, %v4138_v36 }
 0x1f4   : > { %3125 = vlog2.f32 %v1056_v38  ;;  %v1062_v17 = vand.u32 2147483647, %v4111_v10  ;;  %v1077_v7 = vmul.f32 -0.5, %v4127_v26  ;;  %v1101_v39 = vadd.f32 1.0, %v4161_v63 }
 0x1f5   : > { %3127 = vpow2.f32 %v982_v21  ;;  %1482 = vmatprep.mubr.bf16.mxu1 %v1227_v23  ;;  %vm4234_vm4 = vcmp.lt.f32.partialorder %v1026_v60, 0.0004427343  ;;  %v1043_v42 = vmul.f32 %v4083_v43, %v1042_v2  ;;  %vm4239_vm5 = vcmp.lt.f32.partialorder %v1044_v62, 0.0004427343 }
 0x1f6   : > { %3129 = vlog2.f32 %v1074_v52  ;;  %v1119_v21 = vadd.f32 1.0, %v4176_v25  ;;  %v1070_v46 = vmul.f32 %v4121_v20, %v1069_v4  ;;  %vm4245_vm6 = vcmp.lt.f32.partialorder %v1071_v9, 0.0004427343 }
 0x1f7   : > { %v4222_v22 = vpop.eup %3111  ;;  %v1060_v47 = vadd.f32 1.0, %v1059_v16  ;;  %3131 = vlog2.f32 %v1101_v39  ;;  %v1088_v38 = vmul.f32 %v4138_v36, %v1087_v28  ;;  %vm4250_vm7 = vcmp.lt.f32.partialorder %v1089_v29, 0.0004427343 }
 0x1f8   : > { %v4225_v31 = vpop.eup %3113  ;;  %3133 = vlog2.f32 %v1119_v21  ;;  %vm4254_vm8 = vcmp.lt.f32.partialorder %v1062_v17, 0.0004427343  ;;  %v1078_v20 = vadd.f32 1.0, %v1077_v7  ;;  %v1104_v4 = vmul.f32 -0.5, %v4161_v63 }
 0x1f9   : > { %v4230_v34 = vpop.eup %3115  ;;  %vm920_vm9 = vcmp.gt.f32.partialorder %v4024_v49, 20.0  ;;  %vm922_vm10 = vcmp.gt.f32.partialorder %v4034_v55, 20.0  ;;  %v1122_v33 = vmul.f32 -0.5, %v4176_v25  ;;  %v1092_v16 = vadd.f32 1.0, %v4151_v56 }
 0x1fa   : > { %v3118_v45 = vpop.eup %3117  ;;  %v1061_v29 = vmul.f32 %v4111_v10, %v1060_v47  ;;  %v1080_v17 = vand.u32 2147483647, %v4127_v26  ;;  %vm925_vm11 = vcmp.gt.f32.partialorder %v4053_v5, 20.0  ;;  %vm927_vm12 = vcmp.gt.f32.partialorder %v4073_v30, 20.0 }
 0x1fb   : > { %v3120_v58 = vpop.eup %3119  ;;  %v1022_v60 = vmul.f32 0.6931472, %v3118_v45  ;;  %3135 = vlog2.f32 %v1092_v16  ;;  %v1105_v10 = vadd.f32 1.0, %v1104_v4  ;;  %v1107_v44 = vand.u32 2147483647, %v4161_v63 }
 0x1fc   : > { %v3122_v62 = vpop.eup %3121  ;;  %v1040_v32 = vmul.f32 0.6931472, %v3120_v58  ;;  %v1110_v50 = vadd.f32 1.0, %v4166_v6  ;;  %vm1081_vm13 = vcmp.lt.f32.partialorder %v1080_v17, 0.0004427343  ;;  %v1113_v2 = vmul.f32 -0.5, %v4166_v6 }
 0x1fd   : > { %v1028_v36 = vsel %vm4234_vm4, %v1025_v19, %v1022_v60  ;;  %v1067_v9 = vmul.f32 0.6931472, %v3122_v62  ;;  %v3124_v52 = vpop.eup %3123  ;;  %v1125_v60 = vand.u32 2147483647, %v4176_v25  ;;  %v1095_v62 = vmul.f32 -0.5, %v4151_v56 }
 0x1fe   : > { %v1046_v23 = vsel %vm4239_vm5, %v1043_v42, %v1040_v32  ;;  %v1204_v28 = vsel %vm916_vm0, %v4005_v35, %v1028_v36  ;;  %v1085_v39 = vmul.f32 0.6931472, %v3124_v52  ;;  %v3126_v41 = vpop.eup %3125  ;;  %v1079_v35 = vmul.f32 %v4127_v26, %v1078_v20 }
 0x1ff   : > { %v1206_v19 = vsel %vm918_vm1, %v4009_v37, %v1046_v23  ;;  %v1073_v7 = vsel %vm4245_vm6, %v1070_v46, %v1067_v9  ;;  %v4281_v21 = vpop.eup %3127  ;;  %v1058_v45 = vmul.f32 0.6931472, %v3126_v41  ;;  %v1123_v46 = vadd.f32 1.0, %v1122_v33 }
 0x200   : > { %v1226_v42 = vpack.c.bf16 %v1206_v19, %v1204_v28  ;;  %v1091_v37 = vsel %vm4250_vm7, %v1088_v38, %v1085_v39  ;;  %v3130_v47 = vpop.eup %3129  ;;  %v1209_v58 = vsel %vm921_vm2, %v4029_v53, %v1073_v7  ;;  %3137 = vlog2.f32 %v1110_v50 }
 0x201   : > { %v1211_v26 = vsel %vm923_vm3, %v4037_v51, %v1091_v37  ;;  %v1064_v38 = vsel %vm4254_vm8, %v1061_v29, %v1058_v45  ;;  %v1076_v32 = vmul.f32 0.6931472, %v3130_v47  ;;  %v3132_v20 = vpop.eup %3131  ;;  %v1106_v4 = vmul.f32 %v4161_v63, %v1105_v10 }
 0x202   : > { %1483 = vmatmul.mubr.bf16.gmra.mrb[4].mxu1 %v1226_v42  ;;  %v1229_v43 = vpack.c.bf16 %v1211_v26, %v1209_v58  ;;  %vm4297_vm14 = vcmp.lt.f32.partialorder %v1107_v44, 0.0004427343  ;;  %v1137_v51 = vadd.f32 1.0, %v4203_v24  ;;  %v3134_v36 = vpop.eup %3133  ;;  %v1103_v33 = vmul.f32 0.6931472, %v3132_v20 }
 0x203   : > { %v1082_v9 = vsel %vm1081_vm13, %v1079_v35, %v1076_v32  ;;  %v1124_v16 = vmul.f32 %v4176_v25, %v1123_v46  ;;  %v1208_v52 = vsel %vm920_vm9, %v4024_v49, %v1064_v38  ;;  %v1121_v23 = vmul.f32 0.6931472, %v3134_v36 }
 0x204   : > { %1492 = vmatprep.mubr.bf16.mxu1 %v1229_v43  ;;  %v1210_v63 = vsel %vm922_vm10, %v4034_v55, %v1082_v9  ;;  %3139 = vlog2.f32 %v1137_v51  ;;  %v1109_v29 = vsel %vm4297_vm14, %v1106_v4, %v1103_v33  ;;  %vm1126_vm15 = vcmp.lt.f32.partialorder %v1125_v60, 0.0004427343 }
 0x205   : > { %v1228_v28 = vpack.c.bf16 %v1210_v63, %v1208_v52  ;;  %v1096_v17 = vadd.f32 1.0, %v1095_v62  ;;  %v1127_v19 = vsel %vm1126_vm15, %v1124_v16, %v1121_v23  ;;  %v1098_v25 = vand.u32 2147483647, %v4151_v56  ;;  %v3136_v49 = vpop.eup %3135 }
 0x206   : > { %v1116_v7 = vand.u32 2147483647, %v4166_v6  ;;  %v1155_v39 = vadd.f32 1.0, %v4214_v18  ;;  %v1213_v55 = vsel %vm925_vm11, %v4053_v5, %v1109_v29  ;;  %v1215_v41 = vsel %vm927_vm12, %v4073_v30, %v1127_v19 }
 0x207   : > { %v1114_v42 = vadd.f32 1.0, %v1113_v2  ;;  %v1128_v35 = vadd.f32 1.0, %v4196_v27  ;;  %v1231_v10 = vpack.c.bf16 %v1215_v41, %v1213_v55  ;;  %v1094_v44 = vmul.f32 0.6931472, %v3136_v49 }
 0x208   : > { %3141 = vlog2.f32 %v1155_v39  ;;  %v1140_v37 = vmul.f32 -0.5, %v4203_v24  ;;  %v1158_v45 = vmul.f32 -0.5, %v4214_v18  ;;  %vm924_vm0 = vcmp.gt.f32.partialorder %v4048_v1, 20.0 }
 0x209   : > { %3143 = vlog2.f32 %v1128_v35  ;;  %vm926_vm1 = vcmp.gt.f32.partialorder %v4058_v8, 20.0  ;;  %v1097_v5 = vmul.f32 %v4151_v56, %v1096_v17  ;;  %v1146_v30 = vadd.f32 1.0, %v4208_v0  ;;  %v3049_v17 = vld [vmem:[%s5022_s5 + $0x58] sm:$0xff]  }
 0x20a   : > { %1493 = vmatmul.mubr.bf16.gmra.mrb[8].mxu1 %v1228_v28  ;;  %v3138_v46 = vpop.eup %3137  ;;  %vm4328_vm2 = vcmp.lt.f32.partialorder %v1098_v25, 0.0004427343  ;;  %v1115_v47 = vmul.f32 %v4166_v6, %v1114_v42  ;;  %vm4333_vm3 = vcmp.lt.f32.partialorder %v1116_v7, 0.0004427343  ;;  %v1131_v26 = vmul.f32 -0.5, %v4196_v27 }
 0x20b   : > { %1502 = vmatprep.mubr.bf16.mxu1 %v1231_v10  ;;  %v1100_v60 = vsel %vm4328_vm2, %v1097_v5, %v1094_v44  ;;  %v1112_v62 = vmul.f32 0.6931472, %v3138_v46  ;;  %3145 = vlog2.f32 %v1146_v30  ;;  %v1173_v56 = vadd.f32 1.0, %v4225_v31 }
 0x20c   : > { %vm929_vm4 = vcmp.gt.f32.partialorder %v4100_v40, 20.0  ;;  %v1141_v43 = vadd.f32 1.0, %v1140_v37  ;;  %v1143_v38 = vand.u32 2147483647, %v4203_v24  ;;  %v1159_v32 = vadd.f32 1.0, %v1158_v45 }
 0x20d   : > { %v1161_v6 = vand.u32 2147483647, %v4214_v18  ;;  %v1118_v4 = vsel %vm4333_vm3, %v1115_v47, %v1112_v62  ;;  %v1149_v53 = vmul.f32 -0.5, %v4208_v0  ;;  %3147 = vlog2.f32 %v1173_v56 }
 0x20e   : > { %v3140_v20 = vpop.eup %3139  ;;  %v1191_v51 = vadd.f32 1.0, %v4281_v21  ;;  %vm931_vm5 = vcmp.gt.f32.partialorder %v4114_v14, 20.0  ;;  %v1212_v36 = vsel %vm924_vm0, %v4048_v1, %v1100_v60  ;;  %v1214_v9 = vsel %vm926_vm1, %v4058_v8, %v1118_v4 }
 0x20f   : > { %v1139_v33 = vmul.f32 0.6931472, %v3140_v20  ;;  %v1230_v16 = vpack.c.bf16 %v1214_v9, %v1212_v36  ;;  %v1132_v2 = vadd.f32 1.0, %v1131_v26  ;;  %v1134_v52 = vand.u32 2147483647, %v4196_v27 }
 0x210   : > { %3149 = vlog2.f32 %v1191_v51  ;;  %vm928_vm6 = vcmp.gt.f32.partialorder %v4093_v59, 20.0  ;;  %v1142_v63 = vmul.f32 %v4203_v24, %v1141_v43  ;;  %vm4358_vm7 = vcmp.lt.f32.partialorder %v1143_v38, 0.0004427343 }
 0x211   : > { %v1176_v1 = vmul.f32 -0.5, %v4225_v31  ;;  %v1164_v28 = vadd.f32 1.0, %v4222_v22  ;;  %v1160_v8 = vmul.f32 %v4214_v18, %v1159_v32  ;;  %vm4365_vm8 = vcmp.lt.f32.partialorder %v1161_v6, 0.0004427343 }
 0x212   : > { %v3142_v29 = vpop.eup %3141  ;;  %1503 = vmatmul.mubr.bf16.gmra.mrb[12].mxu1 %v1230_v16  ;;  %v1150_v19 = vadd.f32 1.0, %v1149_v53  ;;  %v1194_v25 = vmul.f32 -0.5, %v4281_v21  ;;  %v1145_v7 = vsel %vm4358_vm7, %v1142_v63, %v1139_v33  ;;  %v1182_v49 = vadd.f32 1.0, %v4230_v34 }
 0x213   : > { %v3144_v24 = vpop.eup %3143  ;;  %v1157_v39 = vmul.f32 0.6931472, %v3142_v29  ;;  %3151 = vlog2.f32 %v1164_v28  ;;  %v1133_v41 = vmul.f32 %v4196_v27, %v1132_v2  ;;  %vm4374_vm9 = vcmp.lt.f32.partialorder %v1134_v52, 0.0004427343 }
 0x214   : > { %v1130_v55 = vmul.f32 0.6931472, %v3144_v24  ;;  %v1152_v42 = vand.u32 2147483647, %v4208_v0  ;;  %v1177_v10 = vadd.f32 1.0, %v1176_v1  ;;  %3153 = vlog2.f32 %v1182_v49  ;;  %v3054_v24 = vld [vmem:[%s5022_s5 + $0x28] sm:$0xff]  }
 0x215   : > { %v1163_v35 = vsel %vm4365_vm8, %v1160_v8, %v1157_v39  ;;  %v1179_v44 = vand.u32 2147483647, %v4225_v31  ;;  %v3146_v37 = vpop.eup %3145  ;;  %v1217_v45 = vsel %vm929_vm4, %v4100_v40, %v1145_v7  ;;  %v1151_v5 = vmul.f32 %v4208_v0, %v1150_v19  ;;  %v3052_v19 = vld [vmem:[%s5022_s5 + $0x20] sm:$0xff]   ;;  %v3055_v7 = vld [vmem:[%s5022_s5 + $0x70] sm:$0xff]   ;;  %v3057_v49 = vld [vmem:[%s5022_s5 + $0x78] sm:$0xff]  }
 0x216   : > { %v1219_v27 = vsel %vm931_vm5, %v4114_v14, %v1163_v35  ;;  %v1167_v30 = vmul.f32 -0.5, %v4222_v22  ;;  %v1136_v50 = vsel %vm4374_vm9, %v1133_v41, %v1130_v55  ;;  %v1148_v47 = vmul.f32 0.6931472, %v3146_v37  ;;  %v3056_v39 = vld [vmem:[%s5022_s5 + $0x30] sm:$0xff]   ;;  %v3058_v55 = vld [vmem:[%s5022_s5 + $0x38] sm:$0xff]  }
 0x217   : > { %v1233_v46 = vpack.c.bf16 %v1219_v27, %v1217_v45  ;;  %v1195_v58 = vadd.f32 1.0, %v1194_v25  ;;  %v3148_v26 = vpop.eup %3147  ;;  %vm930_vm10 = vcmp.gt.f32.partialorder %v4105_v3, 20.0  ;;  %vm1153_vm11 = vcmp.lt.f32.partialorder %v1152_v42, 0.0004427343  ;;  %v3053_v25 = vld [vmem:[%s5022_s5 + $0x68] sm:$0xff]  }
 0x218   : > { %v1197_v40 = vand.u32 2147483647, %v4281_v21  ;;  %v1185_v60 = vmul.f32 -0.5, %v4230_v34  ;;  %v1154_v14 = vsel %vm1153_vm11, %v1151_v5, %v1148_v47  ;;  %v1175_v62 = vmul.f32 0.6931472, %v3148_v26 }
 0x219   : > { %1512 = vmatprep.mubr.bf16.mxu1 %v1233_v46  ;;  %v1178_v0 = vmul.f32 %v4225_v31, %v1177_v10  ;;  %vm4396_vm12 = vcmp.lt.f32.partialorder %v1179_v44, 0.0004427343  ;;  %v1216_v38 = vsel %vm928_vm6, %v4093_v59, %v1136_v50  ;;  %v1218_v32 = vsel %vm930_vm10, %v4105_v3, %v1154_v14  ;;  %v1268_v41 = vld [vmem:[%s5021_s4] sm:$0x3] }
 0x21a   : > { %v3150_v43 = vpop.eup %3149  ;;  %v1168_v6 = vadd.f32 1.0, %v1167_v30  ;;  %v1170_v20 = vand.u32 2147483647, %v4222_v22  ;;  %v1232_v4 = vpack.c.bf16 %v1218_v32, %v1216_v38  ;;  %v1196_v31 = vmul.f32 %v4281_v21, %v1195_v58 }
 0x21b   : > { %v1181_v53 = vsel %vm4396_vm12, %v1178_v0, %v1175_v62  ;;  %v1193_v51 = vmul.f32 0.6931472, %v3150_v43  ;;  %vm1198_vm13 = vcmp.lt.f32.partialorder %v1197_v40, 0.0004427343  ;;  %v1186_v36 = vadd.f32 1.0, %v1185_v60 }
 0x21c   : > { %vm933_vm14 = vcmp.gt.f32.partialorder %v4154_v57, 20.0  ;;  %vm935_vm15 = vcmp.gt.f32.partialorder %v4172_v54, 20.0  ;;  %1513 = vmatmul.mubr.bf16.gmra.mrb[16].mxu1 %v1232_v4  ;;  %v1188_v3 = vand.u32 2147483647, %v4230_v34  ;;  %v1169_v52 = vmul.f32 %v4222_v22, %v1168_v6  ;;  %v3047_v22 = vld [vmem:[%s5022_s5 + $0x50] sm:$0xff]  }
 0x21d   : > { %v3152_v9 = vpop.eup %3151  ;;  %v1199_v59 = vsel %vm1198_vm13, %v1196_v31, %v1193_v51  ;;  %v1221_v33 = vsel %vm933_vm14, %v4154_v57, %v1181_v53  ;;  %vm1171_vm0 = vcmp.lt.f32.partialorder %v1170_v20, 0.0004427343  ;;  %v1187_v28 = vmul.f32 %v4230_v34, %v1186_v36  ;;  %v3048_v34 = vld [vmem:[%s5022_s5 + $0x10] sm:$0xff]   ;;  %2675 = vmatprep.subr.bf16.mxu0 %v3047_v22 }
 0x21e   : > { %v1223_v16 = vsel %vm935_vm15, %v4172_v54, %v1199_v59  ;;  %v1166_v2 = vmul.f32 0.6931472, %v3152_v9  ;;  %v3154_v63 = vpop.eup %3153  ;;  %vm1189_vm1 = vcmp.lt.f32.partialorder %v1188_v3, 0.0004427343  ;;  %vm932_vm2 = vcmp.gt.f32.partialorder %v4149_v48, 20.0  ;;  %2676 = vmatpush3.bf16.msra.mxu0 %v3048_v34 }
 0x21f   : > { %v1235_v21 = vpack.c.bf16 %v1223_v16, %v1221_v33  ;;  %v1184_v1 = vmul.f32 0.6931472, %v3154_v63  ;;  %vm934_vm3 = vcmp.gt.f32.partialorder %v4159_v61, 20.0  ;;  %2677 = vmatprep.subr.bf16.mxu0 %v3049_v17  ;;  %v4460_v18 = vrot.slane %v1268_v41, %v740_v13 }
 0x220   : > { %v1172_v23 = vsel %vm1171_vm0, %v1169_v52, %v1166_v2  ;;  %v4464_v42 = vrot.slane %v1268_v41, %v744_v15 }
 0x221   : > { %1522 = vmatprep.mubr.bf16.mxu1 %v1235_v21  ;;  %v1190_v29 = vsel %vm1189_vm1, %v1187_v28, %v1184_v1  ;;  %v1220_v57 = vsel %vm932_vm2, %v4149_v48, %v1172_v23  ;;  %v3050_v48 = vld [vmem:[%s5022_s5 + $0x18] sm:$0xff]  }
 0x222   : > { %v1222_v54 = vsel %vm934_vm3, %v4159_v61, %v1190_v29  ;;  %v3051_v61 = vld [vmem:[%s5022_s5 + $0x60] sm:$0xff]   ;;  %2678 = vmatpush3.bf16.msra.mxu0 %v3050_v48 }
 0x223   : > { %v1234_v8 = vpack.c.bf16 %v1222_v54, %v1220_v57  ;;  %2679 = vmatprep.subr.bf16.mxu0 %v3051_v61 }
 0x225   : > { %1523 = vmatmul.mubr.bf16.gmra.mrb[20].mxu1 %v1234_v8 }
 0x226   : > { %2680 = vmatpush3.bf16.msra.mxu0 %v3052_v19 }
 0x227   : > { %2681 = vmatprep.subr.bf16.mxu0 %v3053_v25 }
 0x22a   : > { %2682 = vmatpush3.bf16.msra.mxu0 %v3054_v24 }
 0x22b   : > { %2683 = vmatprep.subr.bf16.mxu0 %v3055_v7 }
 0x22e   : > { %2684 = vmatpush3.bf16.msra.mxu0 %v3056_v39 }
 0x22f   : > { %2685 = vmatprep.subr.bf16.mxu0 %v3057_v49 }
 0x232   : > { %2686 = vmatpush3.bf16.msra.mxu0 %v3058_v55 }
 0x2bc   : > { %v1474_v35 = vpop.f32.mrb[0].mxu1 }
 0x2bd   : > { %v4467_v10 = vadd.f32 %v1474_v35, %v4460_v18  ;;  %v1476_v44 = vpop.f32.mrb[1].mxu1 }
 0x2be   : > { %v4470_v37 = vadd.f32 %v1476_v44, %v4464_v42  ;;  %v1478_v45 = vpop.f32.mrb[2].mxu1 }
 0x2bf   : > { %v1557_v27 = vmul.f32 1.442695, %v4467_v10  ;;  %v4474_v5 = vadd.f32 %v1478_v45, %v4460_v18  ;;  %v1480_v13 = vpop.f32.mrb[3].mxu1  ;;  %vm1533_vm4 = vcmp.gt.f32.partialorder %v4467_v10, 20.0 }
 0x2c0   : > { %v1559_v30 = vmul.f32 1.442695, %v4470_v37  ;;  %v4478_v12 = vadd.f32 %v1480_v13, %v4464_v42  ;;  %vm1534_vm9 = vcmp.gt.f32.partialorder %v4470_v37, 20.0 }
 0x2c1   : > { %3155 = vpow2.f32 %v1557_v27  ;;  %v1561_v15 = vmul.f32 1.442695, %v4474_v5  ;;  %vm1535_vm5 = vcmp.gt.f32.partialorder %v4474_v5, 20.0 }
 0x2c2   : > { %3157 = vpow2.f32 %v1559_v30  ;;  %v1563_v46 = vmul.f32 1.442695, %v4478_v12  ;;  %vm1536_vm11 = vcmp.gt.f32.partialorder %v4478_v12, 20.0 }
 0x2c3   : > { %3159 = vpow2.f32 %v1561_v15 }
 0x2c4   : > { %3161 = vpow2.f32 %v1563_v46 }
 0x2cb   : > { %v3156_v50 = vpop.eup %3155 }
 0x2cc   : > { %v3158_v47 = vpop.eup %3157  ;;  %v1605_v58 = vadd.f32 1.0, %v3156_v50  ;;  %v1608_v62 = vmul.f32 -0.5, %v3156_v50  ;;  %v1611_v53 = vand.u32 2147483647, %v3156_v50 }
 0x2cd   : > { %v3160_v26 = vpop.eup %3159  ;;  %v1614_v40 = vadd.f32 1.0, %v3158_v47  ;;  %v1617_v32 = vmul.f32 -0.5, %v3158_v47  ;;  %v1620_v36 = vand.u32 2147483647, %v3158_v47 }
 0x2ce   : > { %v4482_v60 = vpop.eup %3161  ;;  %3163 = vlog2.f32 %v1605_v58  ;;  %v1623_v14 = vadd.f32 1.0, %v3160_v26  ;;  %v1626_v56 = vmul.f32 -0.5, %v3160_v26  ;;  %v1609_v43 = vadd.f32 1.0, %v1608_v62 }
 0x2cf   : > { %3165 = vlog2.f32 %v1614_v40  ;;  %v1632_v0 = vadd.f32 1.0, %v4482_v60  ;;  %v1635_v4 = vmul.f32 -0.5, %v4482_v60  ;;  %v1629_v59 = vand.u32 2147483647, %v3160_v26 }
 0x2d0   : > { %3167 = vlog2.f32 %v1623_v14  ;;  %v1627_v9 = vadd.f32 1.0, %v1626_v56  ;;  %v1610_v52 = vmul.f32 %v3156_v50, %v1609_v43  ;;  %v1618_v23 = vadd.f32 1.0, %v1617_v32 }
 0x2d1   : > { %3169 = vlog2.f32 %v1632_v0  ;;  %v1636_v57 = vadd.f32 1.0, %v1635_v4  ;;  %vm4503_vm6 = vcmp.lt.f32.partialorder %v1611_v53, 0.0004427343  ;;  %v1638_v19 = vand.u32 2147483647, %v4482_v60 }
 0x2d2   : > { %v1628_v61 = vmul.f32 %v3160_v26, %v1627_v9  ;;  %vm1630_vm7 = vcmp.lt.f32.partialorder %v1629_v59, 0.0004427343  ;;  %v1619_v7 = vmul.f32 %v3158_v47, %v1618_v23  ;;  %vm4511_vm8 = vcmp.lt.f32.partialorder %v1620_v36, 0.0004427343 }
 0x2d3   : > { %v1637_v35 = vmul.f32 %v4482_v60, %v1636_v57  ;;  %vm1639_vm10 = vcmp.lt.f32.partialorder %v1638_v19, 0.0004427343 }
 0x2d5   : > { %v1484_v38 = vpop.f32.mrb[4].mxu1 }
 0x2d6   : > { %v4487_v6 = vadd.f32 %v1484_v38, %v4460_v18  ;;  %v1486_v20 = vpop.f32.mrb[5].mxu1 }
 0x2d7   : > { %v4492_v51 = vadd.f32 %v1486_v20, %v4464_v42  ;;  %v1488_v31 = vpop.f32.mrb[6].mxu1 }
 0x2d8   : > { %v1565_v3 = vmul.f32 1.442695, %v4487_v6  ;;  %v4496_v33 = vadd.f32 %v1488_v31, %v4460_v18  ;;  %v1490_v16 = vpop.f32.mrb[7].mxu1  ;;  %v3164_v2 = vpop.eup %3163  ;;  %vm1537_vm1 = vcmp.gt.f32.partialorder %v4487_v6, 20.0 }
 0x2d9   : > { %v1567_v63 = vmul.f32 1.442695, %v4492_v51  ;;  %v4500_v21 = vadd.f32 %v1490_v16, %v4464_v42  ;;  %v3166_v1 = vpop.eup %3165  ;;  %v1607_v28 = vmul.f32 0.6931472, %v3164_v2  ;;  %vm1538_vm12 = vcmp.gt.f32.partialorder %v4492_v51, 20.0 }
 0x2da   : > { %3171 = vpow2.f32 %v1565_v3  ;;  %v1569_v29 = vmul.f32 1.442695, %v4496_v33  ;;  %v3168_v54 = vpop.eup %3167  ;;  %v1616_v34 = vmul.f32 0.6931472, %v3166_v1  ;;  %vm1539_vm2 = vcmp.gt.f32.partialorder %v4496_v33, 20.0 }
 0x2db   : > { %3173 = vpow2.f32 %v1567_v63  ;;  %v1571_v22 = vmul.f32 1.442695, %v4500_v21  ;;  %v1613_v17 = vsel %vm4503_vm6, %v1610_v52, %v1607_v28  ;;  %v1625_v48 = vmul.f32 0.6931472, %v3168_v54  ;;  %v3170_v25 = vpop.eup %3169 }
 0x2dc   : > { %v1634_v41 = vmul.f32 0.6931472, %v3170_v25  ;;  %v1821_v44 = vsel %vm1533_vm4, %v4467_v10, %v1613_v17  ;;  %v1622_v30 = vsel %vm4511_vm8, %v1619_v7, %v1616_v34  ;;  %vm1540_vm13 = vcmp.gt.f32.partialorder %v4500_v21, 20.0 }
 0x2dd   : > { %3175 = vpow2.f32 %v1571_v22  ;;  %v1494_v24 = vpop.f32.mrb[8].mxu1  ;;  %v1631_v49 = vsel %vm1630_vm7, %v1628_v61, %v1625_v48  ;;  %v1822_v58 = vsel %vm1534_vm9, %v4470_v37, %v1622_v30 }
 0x2de   : > { %3177 = vpow2.f32 %v1569_v29  ;;  %v1496_v55 = vpop.f32.mrb[9].mxu1  ;;  %v1823_v45 = vsel %vm1535_vm5, %v4474_v5, %v1631_v49  ;;  %v1640_v5 = vsel %vm1639_vm10, %v1637_v35, %v1634_v41  ;;  %v4534_v47 = vadd.f32 %v1494_v24, %v4460_v18 }
 0x2df   : > { %v4523_v27 = vadd.f32 %v1496_v55, %v4464_v42  ;;  %v1498_v13 = vpop.f32.mrb[10].mxu1  ;;  %v1845_v15 = vpack.c.bf16 %v1823_v45, %v1821_v44  ;;  %v1824_v26 = vsel %vm1536_vm11, %v4478_v12, %v1640_v5 }
 0x2e0   : > { %v1500_v46 = vpop.f32.mrb[11].mxu1  ;;  %v1846_v60 = vpack.c.bf16 %v1824_v26, %v1822_v58  ;;  %v4542_v0 = vadd.f32 %v1498_v13, %v4460_v18  ;;  %v1573_v43 = vmul.f32 1.442695, %v4534_v47  ;;  %vm1541_vm8 = vcmp.gt.f32.partialorder %v4534_v47, 20.0 }
 0x2e1   : > { %v1575_v10 = vmul.f32 1.442695, %v4523_v27  ;;  %v4531_v50 = vadd.f32 %v1500_v46, %v4464_v42  ;;  %vm1542_vm4 = vcmp.gt.f32.partialorder %v4523_v27, 20.0 }
 0x2e2   : > { %2024 = vmatprep.mubr.bf16.mxu0 %v1846_v60  ;;  %v1577_v53 = vmul.f32 1.442695, %v4542_v0  ;;  %vm1543_vm9 = vcmp.gt.f32.partialorder %v4542_v0, 20.0 }
 0x2e3   : > { %3179 = vpow2.f32 %v1575_v10  ;;  %v1579_v40 = vmul.f32 1.442695, %v4531_v50  ;;  %2025 = vmatmul.mubr.bf16.vlgmr.msra.gmra.mrb[24].mxu0 %v1845_v15  ;;  %vm1544_vm7 = vcmp.gt.f32.partialorder %v4531_v50, 20.0 }
 0x2e4   : > { %v4539_v14 = vpop.eup %3171 }
 0x2e5   : > { %v3174_v62 = vpop.eup %3173  ;;  %3181 = vpow2.f32 %v1579_v40  ;;  %v1641_v56 = vadd.f32 1.0, %v4539_v14  ;;  %v1504_v12 = vpop.f32.mrb[12].mxu1  ;;  %v1644_v29 = vmul.f32 -0.5, %v4539_v14  ;;  %v1647_v57 = vand.u32 2147483647, %v4539_v14 }
 0x2e6   : > { %v1650_v37 = vadd.f32 1.0, %v3174_v62  ;;  %v4549_v20 = vadd.f32 %v1504_v12, %v4460_v18  ;;  %v1506_v4 = vpop.f32.mrb[13].mxu1  ;;  %v1653_v16 = vmul.f32 -0.5, %v3174_v62  ;;  %v1656_v28 = vand.u32 2147483647, %v3174_v62 }
 0x2e7   : > { %v3176_v38 = vpop.eup %3175  ;;  %v4553_v31 = vadd.f32 %v1506_v4, %v4464_v42  ;;  %v1508_v36 = vpop.f32.mrb[14].mxu1  ;;  %v1645_v7 = vadd.f32 1.0, %v1644_v29  ;;  %vm4580_vm15 = vcmp.lt.f32.partialorder %v1647_v57, 0.0004427343 }
 0x2e8   : > { %v4546_v32 = vpop.eup %3177  ;;  %3183 = vlog2.f32 %v1650_v37  ;;  %v1668_v9 = vadd.f32 1.0, %v3176_v38  ;;  %v1581_v59 = vmul.f32 1.442695, %v4549_v20  ;;  %v1510_v3 = vpop.f32.mrb[15].mxu1  ;;  %v4558_v52 = vadd.f32 %v1508_v36, %v4460_v18 }
 0x2e9   : > { %3185 = vlog2.f32 %v1641_v56  ;;  %v1583_v2 = vmul.f32 1.442695, %v4553_v31  ;;  %v1671_v63 = vmul.f32 -0.5, %v3176_v38  ;;  %v1659_v23 = vadd.f32 1.0, %v4546_v32 }
 0x2ea   : > { %3187 = vpow2.f32 %v1573_v43  ;;  %v4566_v54 = vadd.f32 %v1510_v3, %v4464_v42  ;;  %v1654_v8 = vadd.f32 1.0, %v1653_v16  ;;  %v1674_v22 = vand.u32 2147483647, %v3176_v38 }
 0x2eb   : > { %3189 = vlog2.f32 %v1668_v9  ;;  %v1585_v17 = vmul.f32 1.442695, %v4558_v52  ;;  %v1672_v61 = vadd.f32 1.0, %v1671_v63  ;;  %v1662_v19 = vmul.f32 -0.5, %v4546_v32 }
 0x2ec   : > { %3191 = vpow2.f32 %v1577_v53  ;;  %vm4576_vm14 = vcmp.lt.f32.partialorder %v1656_v28, 0.0004427343  ;;  %v1587_v55 = vmul.f32 1.442695, %v4566_v54  ;;  %v1655_v35 = vmul.f32 %v3174_v62, %v1654_v8 }
 0x2ed   : > { %v4561_v1 = vpop.eup %3179  ;;  %3193 = vpow2.f32 %v1581_v59  ;;  %vm4585_vm0 = vcmp.lt.f32.partialorder %v1674_v22, 0.0004427343  ;;  %v1673_v26 = vmul.f32 %v3176_v38, %v1672_v61  ;;  %v1663_v40 = vadd.f32 1.0, %v1662_v19 }
 0x2ee   : > { %3195 = vpow2.f32 %v1583_v2  ;;  %v1686_v48 = vadd.f32 1.0, %v4561_v1  ;;  %v1689_v46 = vmul.f32 -0.5, %v4561_v1  ;;  %v1665_v60 = vand.u32 2147483647, %v4546_v32 }
 0x2ef   : > { %v4568_v34 = vpop.eup %3181  ;;  %3197 = vlog2.f32 %v1659_v23  ;;  %v1514_v41 = vpop.f32.mrb[16].mxu1  ;;  %v1646_v37 = vmul.f32 %v4539_v14, %v1645_v7  ;;  %v1692_v12 = vand.u32 2147483647, %v4561_v1  ;;  %v1664_v28 = vmul.f32 %v4546_v32, %v1663_v40 }
 0x2f0   : > { %v1704_v25 = vadd.f32 1.0, %v4568_v34  ;;  %3199 = vlog2.f32 %v1686_v48  ;;  %v4590_v13 = vadd.f32 %v1514_v41, %v4460_v18  ;;  %v1516_v30 = vpop.f32.mrb[17].mxu1  ;;  %v1707_v4 = vmul.f32 -0.5, %v4568_v34 }
 0x2f1   : > { %v4597_v5 = vadd.f32 %v1516_v30, %v4464_v42  ;;  %v1518_v58 = vpop.f32.mrb[18].mxu1  ;;  %v1690_v16 = vadd.f32 1.0, %v1689_v46  ;;  %vm4622_vm3 = vcmp.lt.f32.partialorder %v1665_v60, 0.0004427343  ;;  %vm4635_vm5 = vcmp.lt.f32.partialorder %v1692_v12, 0.0004427343 }
 0x2f2   : > { %v3184_v49 = vpop.eup %3183  ;;  %3201 = vlog2.f32 %v1704_v25  ;;  %v4602_v56 = vadd.f32 %v1518_v58, %v4460_v18  ;;  %v1520_v43 = vpop.f32.mrb[19].mxu1  ;;  %v1589_v53 = vmul.f32 1.442695, %v4590_v13  ;;  %v1708_v32 = vadd.f32 1.0, %v1707_v4 }
 0x2f3   : > { %v3186_v45 = vpop.eup %3185  ;;  %3203 = vpow2.f32 %v1585_v17  ;;  %v1652_v15 = vmul.f32 0.6931472, %v3184_v49  ;;  %v4613_v3 = vadd.f32 %v1520_v43, %v4464_v42  ;;  %v1591_v63 = vmul.f32 1.442695, %v4597_v5 }
 0x2f4   : > { %v4593_v10 = vpop.eup %3187  ;;  %v1643_v9 = vmul.f32 0.6931472, %v3186_v45  ;;  %3205 = vpow2.f32 %v1587_v55  ;;  %v1710_v25 = vand.u32 2147483647, %v4568_v34  ;;  %v1593_v41 = vmul.f32 1.442695, %v4602_v56 }
 0x2f5   : > { %v3190_v62 = vpop.eup %3189  ;;  %v1658_v38 = vsel %vm4576_vm14, %v1655_v35, %v1652_v15  ;;  %v1677_v14 = vadd.f32 1.0, %v4593_v10  ;;  %3207 = vpow2.f32 %v1589_v53  ;;  %v1709_v43 = vmul.f32 %v4568_v34, %v1708_v32 }
 0x2f6   : > { %v1670_v36 = vmul.f32 0.6931472, %v3190_v62  ;;  %v4610_v59 = vpop.eup %3191  ;;  %v1826_v8 = vsel %vm1538_vm12, %v4492_v51, %v1658_v38  ;;  %v1649_v19 = vsel %vm4580_vm15, %v1646_v37, %v1643_v9  ;;  %v1595_v51 = vmul.f32 1.442695, %v4613_v3 }
 0x2f7   : > { %v4616_v2 = vpop.eup %3193  ;;  %3209 = vlog2.f32 %v1677_v14  ;;  %v1825_v46 = vsel %vm1537_vm1, %v4487_v6, %v1649_v19  ;;  %vm1711_vm6 = vcmp.lt.f32.partialorder %v1710_v25, 0.0004427343  ;;  %v1695_v53 = vadd.f32 1.0, %v4610_v59 }
 0x2f8   : > { %v1676_v23 = vsel %vm4585_vm0, %v1673_v26, %v1670_v36  ;;  %v4626_v57 = vpop.eup %3195  ;;  %v1524_v7 = vpop.f32.mrb[20].mxu1  ;;  %3211 = vpow2.f32 %v1591_v63  ;;  %v1713_v19 = vadd.f32 1.0, %v4616_v2  ;;  %vm1546_vm12 = vcmp.gt.f32.partialorder %v4553_v31, 20.0 }
 0x2f9   : > { %v1828_v22 = vsel %vm1540_vm13, %v4500_v21, %v1676_v23  ;;  %v3198_v48 = vpop.eup %3197  ;;  %v1691_v21 = vmul.f32 %v4561_v1, %v1690_v16  ;;  %v4646_v35 = vadd.f32 %v1524_v7, %v4460_v18  ;;  %v1526_v44 = vpop.f32.mrb[21].mxu1  ;;  %3213 = vpow2.f32 %v1595_v51 }
 0x2fa   : > { %v1848_v61 = vpack.c.bf16 %v1828_v22, %v1826_v8  ;;  %v3200_v24 = vpop.eup %3199  ;;  %v1661_v49 = vmul.f32 0.6931472, %v3198_v48  ;;  %v4651_v30 = vadd.f32 %v1526_v44, %v4464_v42  ;;  %v1528_v15 = vpop.f32.mrb[22].mxu1  ;;  %3215 = vpow2.f32 %v1593_v41 }
 0x2fb   : > { %v1688_v39 = vmul.f32 0.6931472, %v3200_v24  ;;  %v1597_v26 = vmul.f32 1.442695, %v4646_v35  ;;  %v4660_v40 = vadd.f32 %v1528_v15, %v4460_v18  ;;  %v1530_v60 = vpop.f32.mrb[23].mxu1  ;;  %v1680_v18 = vmul.f32 -0.5, %v4593_v10 }
 0x2fc   : > { %v3202_v55 = vpop.eup %3201  ;;  %2032 = vmatprep.mubr.bf16.mxu0 %v1848_v61  ;;  %v1667_v1 = vsel %vm4622_vm3, %v1664_v28, %v1661_v49  ;;  %v1599_v37 = vmul.f32 1.442695, %v4651_v30  ;;  %v4668_v12 = vadd.f32 %v1530_v60, %v4464_v42  ;;  %v1698_v16 = vmul.f32 -0.5, %v4610_v59 }
 0x2fd   : > { %v4648_v45 = vpop.eup %3203  ;;  %v1706_v58 = vmul.f32 0.6931472, %v3202_v55  ;;  %v1827_v62 = vsel %vm1539_vm2, %v4496_v33, %v1667_v1  ;;  %v1694_v4 = vsel %vm4635_vm5, %v1691_v21, %v1688_v39  ;;  %v1601_v33 = vmul.f32 1.442695, %v4660_v40 }
 0x2fe   : > { %v1847_v6 = vpack.c.bf16 %v1827_v62, %v1825_v46  ;;  %v4674_v38 = vpop.eup %3205  ;;  %3217 = vpow2.f32 %v1597_v26  ;;  %v1830_v42 = vsel %vm1542_vm4, %v4523_v27, %v1694_v4  ;;  %v1603_v63 = vmul.f32 1.442695, %v4668_v12 }
 0x2ff   : > { %v1712_v34 = vsel %vm1711_vm6, %v1709_v43, %v1706_v58  ;;  %3219 = vpow2.f32 %v1599_v37  ;;  %v4683_v14 = vpop.eup %3207  ;;  %v1681_v23 = vadd.f32 1.0, %v1680_v18  ;;  %v1722_v28 = vadd.f32 1.0, %v4626_v57 }
 0x300   : > { %2033 = vmatmul.mubr.bf16.gmra.mrb[28].mxu0 %v1847_v6  ;;  %v1832_v36 = vsel %vm1544_vm7, %v4531_v50, %v1712_v34  ;;  %3221 = vlog2.f32 %v1695_v53  ;;  %v1683_v8 = vand.u32 2147483647, %v4593_v10  ;;  %v1725_v27 = vmul.f32 -0.5, %v4626_v57 }
 0x301   : > { %v1850_v9 = vpack.c.bf16 %v1832_v36, %v1830_v42  ;;  %v3210_v29 = vpop.eup %3209  ;;  %3223 = vpow2.f32 %v1601_v33  ;;  %v1740_v50 = vadd.f32 1.0, %v4674_v38  ;;  %v1743_v32 = vmul.f32 -0.5, %v4674_v38 }
 0x302   : > { %v4690_v22 = vpop.eup %3211  ;;  %v1679_v17 = vmul.f32 0.6931472, %v3210_v29  ;;  %3225 = vlog2.f32 %v1722_v28  ;;  %v1699_v48 = vadd.f32 1.0, %v1698_v16  ;;  %v1701_v61 = vand.u32 2147483647, %v4610_v59 }
 0x303   : > { %2040 = vmatprep.mubr.bf16.mxu0 %v1850_v9  ;;  %3227 = vlog2.f32 %v1740_v50  ;;  %v1682_v25 = vmul.f32 %v4593_v10, %v1681_v23  ;;  %v1728_v24 = vand.u32 2147483647, %v4626_v57  ;;  %v1716_v51 = vmul.f32 -0.5, %v4616_v2  ;;  %v4699_v7 = vpop.eup %3213 }
 0x304   : > { %3229 = vpow2.f32 %v1603_v63  ;;  %vm4702_vm10 = vcmp.lt.f32.partialorder %v1683_v8, 0.0004427343  ;;  %v1726_v21 = vadd.f32 1.0, %v1725_v27  ;;  %v1744_v41 = vadd.f32 1.0, %v1743_v32  ;;  %v4710_v39 = vpop.eup %3215 }
 0x305   : > { %3231 = vlog2.f32 %v1713_v19  ;;  %v1685_v55 = vsel %vm4702_vm10, %v1682_v25, %v1679_v17  ;;  %v1746_v10 = vand.u32 2147483647, %v4674_v38  ;;  %v1731_v44 = vadd.f32 1.0, %v4648_v45 }
 0x306   : > { %v1700_v15 = vmul.f32 %v4610_v59, %v1699_v48  ;;  %vm4713_vm11 = vcmp.lt.f32.partialorder %v1701_v61, 0.0004427343  ;;  %v1719_v46 = vand.u32 2147483647, %v4616_v2  ;;  %v1758_v58 = vadd.f32 1.0, %v4690_v22 }
 0x307   : > { %vm1548_vm13 = vcmp.gt.f32.partialorder %v4566_v54, 20.0  ;;  %vm4723_vm14 = vcmp.lt.f32.partialorder %v1728_v24, 0.0004427343  ;;  %v1717_v62 = vadd.f32 1.0, %v1716_v51  ;;  %3233 = vlog2.f32 %v1731_v44 }
 0x308   : > { %v4719_v26 = vpop.eup %3217  ;;  %v1776_v59 = vadd.f32 1.0, %v4699_v7  ;;  %v1829_v37 = vsel %vm1541_vm8, %v4534_v47, %v1685_v55  ;;  %v1727_v6 = vmul.f32 %v4626_v57, %v1726_v21  ;;  %v1734_v4 = vmul.f32 -0.5, %v4648_v45 }
 0x309   : > { %v4728_v43 = vpop.eup %3219  ;;  %3235 = vlog2.f32 %v1758_v58  ;;  %v1745_v53 = vmul.f32 %v4674_v38, %v1744_v41  ;;  %vm4736_vm15 = vcmp.lt.f32.partialorder %v1746_v10, 0.0004427343  ;;  %v1737_v34 = vand.u32 2147483647, %v4648_v45 }
 0x30a   : > { %v3222_v18 = vpop.eup %3221  ;;  %3237 = vlog2.f32 %v1776_v59  ;;  %vm4743_vm0 = vcmp.lt.f32.partialorder %v1719_v46, 0.0004427343  ;;  %v1761_v57 = vmul.f32 -0.5, %v4690_v22  ;;  %v1749_v9 = vadd.f32 1.0, %v4683_v14 }
 0x30b   : > { %v4741_v42 = vpop.eup %3223  ;;  %v1697_v36 = vmul.f32 0.6931472, %v3222_v18  ;;  %v1718_v38 = vmul.f32 %v4616_v2, %v1717_v62  ;;  %v1764_v63 = vand.u32 2147483647, %v4690_v22  ;;  %v1779_v23 = vmul.f32 -0.5, %v4699_v7 }
 0x30c   : > { %v3226_v16 = vpop.eup %3225  ;;  %v1767_v28 = vadd.f32 1.0, %v4710_v39  ;;  %vm1545_vm1 = vcmp.gt.f32.partialorder %v4549_v20, 20.0  ;;  %vm1547_vm2 = vcmp.gt.f32.partialorder %v4558_v52, 20.0  ;;  %v1735_v50 = vadd.f32 1.0, %v1734_v4 }
 0x30d   : > { %v3228_v29 = vpop.eup %3227  ;;  %v1703_v8 = vsel %vm4713_vm11, %v1700_v15, %v1697_v36  ;;  %v1724_v27 = vmul.f32 0.6931472, %v3226_v16  ;;  %3239 = vlog2.f32 %v1749_v9  ;;  %vm4762_vm3 = vcmp.lt.f32.partialorder %v1737_v34, 0.0004427343 }
 0x30e   : > { %v4757_v17 = vpop.eup %3229  ;;  %v1831_v2 = vsel %vm1543_vm9, %v4542_v0, %v1703_v8  ;;  %v1742_v32 = vmul.f32 0.6931472, %v3228_v29  ;;  %v1752_v61 = vmul.f32 -0.5, %v4683_v14  ;;  %vm1550_vm4 = vcmp.gt.f32.partialorder %v4597_v5, 20.0 }
 0x30f   : > { %v3232_v19 = vpop.eup %3231  ;;  %vm1552_vm5 = vcmp.gt.f32.partialorder %v4613_v3, 20.0  ;;  %v1849_v25 = vpack.c.bf16 %v1831_v2, %v1829_v37  ;;  %v1730_v24 = vsel %vm4723_vm14, %v1727_v6, %v1724_v27  ;;  %v1762_v51 = vadd.f32 1.0, %v1761_v57 }
 0x310   : > { %3241 = vlog2.f32 %v1767_v28  ;;  %v1748_v0 = vsel %vm4736_vm15, %v1745_v53, %v1742_v32  ;;  %v1715_v49 = vmul.f32 0.6931472, %v3232_v19  ;;  %v1780_v21 = vadd.f32 1.0, %v1779_v23 }
 0x311   : > { %v1782_v55 = vand.u32 2147483647, %v4699_v7  ;;  %2041 = vmatmul.mubr.bf16.gmra.mrb[32].mxu0 %v1849_v25  ;;  %v1834_v41 = vsel %vm1546_vm12, %v4553_v31, %v1730_v24  ;;  %v1836_v10 = vsel %vm1548_vm13, %v4566_v54, %v1748_v0  ;;  %v1770_v44 = vmul.f32 -0.5, %v4710_v39  ;;  %v3234_v1 = vpop.eup %3233 }
 0x312   : > { %v1794_v15 = vadd.f32 1.0, %v4728_v43  ;;  %v1852_v46 = vpack.c.bf16 %v1836_v10, %v1834_v41  ;;  %v1736_v58 = vmul.f32 %v4648_v45, %v1735_v50  ;;  %vm4783_vm6 = vcmp.lt.f32.partialorder %v1764_v63, 0.0004427343 }
 0x313   : > { %v1753_v62 = vadd.f32 1.0, %v1752_v61  ;;  %v3236_v59 = vpop.eup %3235  ;;  %v1721_v31 = vsel %vm4743_vm0, %v1718_v38, %v1715_v49  ;;  %v1733_v37 = vmul.f32 0.6931472, %v3234_v1  ;;  %v1763_v54 = vmul.f32 %v4690_v22, %v1762_v51 }
 0x314   : > { %3243 = vlog2.f32 %v1794_v15  ;;  %v3238_v6 = vpop.eup %3237  ;;  %2048 = vmatprep.mubr.bf16.mxu0 %v1852_v46  ;;  %v1760_v4 = vmul.f32 0.6931472, %v3236_v59  ;;  %v1781_v18 = vmul.f32 %v4699_v7, %v1780_v21  ;;  %vm4791_vm7 = vcmp.lt.f32.partialorder %v1782_v55, 0.0004427343 }
 0x315   : > { %v1755_v53 = vand.u32 2147483647, %v4683_v14  ;;  %v1739_v33 = vsel %vm4762_vm3, %v1736_v58, %v1733_v37  ;;  %v1778_v34 = vmul.f32 0.6931472, %v3238_v6  ;;  %v1771_v36 = vadd.f32 1.0, %v1770_v44 }
 0x316   : > { %v1812_v47 = vadd.f32 1.0, %v4757_v17  ;;  %v1833_v22 = vsel %vm1545_vm1, %v4549_v20, %v1721_v31  ;;  %v1835_v7 = vsel %vm1547_vm2, %v4558_v52, %v1739_v33  ;;  %v1766_v57 = vsel %vm4783_vm6, %v1763_v54, %v1760_v4 }
 0x317   : > { %v1754_v9 = vmul.f32 %v4683_v14, %v1753_v62  ;;  %v3240_v16 = vpop.eup %3239  ;;  %v1851_v38 = vpack.c.bf16 %v1835_v7, %v1833_v22  ;;  %v1784_v63 = vsel %vm4791_vm7, %v1781_v18, %v1778_v34  ;;  %v1773_v23 = vand.u32 2147483647, %v4710_v39 }
 0x318   : > { %3245 = vlog2.f32 %v1812_v47  ;;  %v1838_v20 = vsel %vm1550_vm4, %v4597_v5, %v1766_v57  ;;  %v1840_v52 = vsel %vm1552_vm5, %v4613_v3, %v1784_v63  ;;  %v1751_v28 = vmul.f32 0.6931472, %v3240_v16 }
 0x319   : > { %v1797_v29 = vmul.f32 -0.5, %v4728_v43  ;;  %2049 = vmatmul.mubr.bf16.gmra.mrb[36].mxu0 %v1851_v38  ;;  %v1854_v8 = vpack.c.bf16 %v1840_v52, %v1838_v20  ;;  %vm4818_vm8 = vcmp.lt.f32.partialorder %v1755_v53, 0.0004427343  ;;  %v1772_v50 = vmul.f32 %v4710_v39, %v1771_v36 }
 0x31a   : > { %v3242_v14 = vpop.eup %3241  ;;  %v1785_v2 = vadd.f32 1.0, %v4719_v26  ;;  %v1757_v5 = vsel %vm4818_vm8, %v1754_v9, %v1751_v28  ;;  %v1815_v3 = vmul.f32 -0.5, %v4757_v17  ;;  %v1803_v48 = vadd.f32 1.0, %v4741_v42 }
 0x31b   : > { %v1769_v32 = vmul.f32 0.6931472, %v3242_v14  ;;  %vm1549_vm9 = vcmp.gt.f32.partialorder %v4590_v13, 20.0  ;;  %2056 = vmatprep.mubr.bf16.mxu0 %v1854_v8  ;;  %vm1774_vm10 = vcmp.lt.f32.partialorder %v1773_v23, 0.0004427343  ;;  %vm1551_vm11 = vcmp.gt.f32.partialorder %v4602_v56, 20.0 }
 0x31c   : > { %3247 = vlog2.f32 %v1785_v2  ;;  %v1798_v19 = vadd.f32 1.0, %v1797_v29  ;;  %v1837_v25 = vsel %vm1549_vm9, %v4590_v13, %v1757_v5  ;;  %v1800_v51 = vand.u32 2147483647, %v4728_v43 }
 0x31d   : > { %v1775_v61 = vsel %vm1774_vm10, %v1772_v50, %v1769_v32  ;;  %3249 = vlog2.f32 %v1803_v48  ;;  %v1816_v21 = vadd.f32 1.0, %v1815_v3  ;;  %v1788_v55 = vmul.f32 -0.5, %v4719_v26 }
 0x31e   : > { %v3244_v39 = vpop.eup %3243  ;;  %v1839_v24 = vsel %vm1551_vm11, %v4602_v56, %v1775_v61  ;;  %v1818_v41 = vand.u32 2147483647, %v4757_v17  ;;  %v1806_v10 = vmul.f32 -0.5, %v4741_v42  ;;  %v1799_v44 = vmul.f32 %v4728_v43, %v1798_v19 }
 0x31f   : > { %v1853_v0 = vpack.c.bf16 %v1839_v24, %v1837_v25  ;;  %v1796_v49 = vmul.f32 0.6931472, %v3244_v39  ;;  %vm1801_vm12 = vcmp.lt.f32.partialorder %v1800_v51, 0.0004427343  ;;  %v1817_v56 = vmul.f32 %v4757_v17, %v1816_v21 }
 0x320   : > { %v1789_v46 = vadd.f32 1.0, %v1788_v55  ;;  %vm1819_vm13 = vcmp.lt.f32.partialorder %v1818_v41, 0.0004427343  ;;  %v1791_v58 = vand.u32 2147483647, %v4719_v26  ;;  %v1807_v60 = vadd.f32 1.0, %v1806_v10 }
 0x321   : > { %2057 = vmatmul.mubr.bf16.gmra.mrb[40].mxu0 %v1853_v0  ;;  %v1802_v1 = vsel %vm1801_vm12, %v1799_v44, %v1796_v49  ;;  %vm1554_vm14 = vcmp.gt.f32.partialorder %v4651_v30, 20.0  ;;  %vm1556_vm15 = vcmp.gt.f32.partialorder %v4668_v12, 20.0  ;;  %v1809_v59 = vand.u32 2147483647, %v4741_v42 }
 0x322   : > { %v3246_v15 = vpop.eup %3245  ;;  %v1842_v31 = vsel %vm1554_vm14, %v4651_v30, %v1802_v1  ;;  %v1790_v4 = vmul.f32 %v4719_v26, %v1789_v46  ;;  %vm1792_vm0 = vcmp.lt.f32.partialorder %v1791_v58, 0.0004427343  ;;  %v1808_v45 = vmul.f32 %v4741_v42, %v1807_v60  ;;  %v4853_v26 = vld [vmem:[%s5023_s6] ss:$0 sm:$0xff] }
 0x323   : > { %v1814_v13 = vmul.f32 0.6931472, %v3246_v15  ;;  %vm1810_vm1 = vcmp.lt.f32.partialorder %v1809_v59, 0.0004427343  ;;  %vm1553_vm2 = vcmp.gt.f32.partialorder %v4646_v35, 20.0  ;;  %vm1555_vm3 = vcmp.gt.f32.partialorder %v4660_v40, 20.0 }
 0x324   : > { %v4858_v29 = vand.u32 127, %v738_v11  ;;  %vm2184_vm5 = vcmask 31744  }
 0x325   : > { %v1820_v62 = vsel %vm1819_vm13, %v1817_v56, %v1814_v13 }
 0x326   : > { %v3248_v43 = vpop.eup %3247  ;;  %v1844_v37 = vsel %vm1556_vm15, %v4668_v12, %v1820_v62  ;;  %vm2171_vm4 = vcmp.eq.s32.totalorder %v4858_v29, 0 }
 0x327   : > { %v3250_v54 = vpop.eup %3249  ;;  %v1856_v6 = vpack.c.bf16 %v1844_v37, %v1842_v31  ;;  %v1787_v17 = vmul.f32 0.6931472, %v3248_v43 }
 0x328   : > { %v1805_v18 = vmul.f32 0.6931472, %v3250_v54 }
 0x329   : > { %2064 = vmatprep.mubr.bf16.mxu0 %v1856_v6  ;;  %v1793_v53 = vsel %vm1792_vm0, %v1790_v4, %v1787_v17 }
 0x32a   : > { %v1811_v33 = vsel %vm1810_vm1, %v1808_v45, %v1805_v18  ;;  %v1841_v30 = vsel %vm1553_vm2, %v4646_v35, %v1793_v53 }
 0x32b   : > { %v1843_v12 = vsel %vm1555_vm3, %v4660_v40, %v1811_v33 }
 0x32c   : > { %v1855_v34 = vpack.c.bf16 %v1843_v12, %v1841_v30 }
 0x32e   : > { %2065 = vmatmul.mubr.bf16.gmra.mrb[44].mxu0 %v1855_v34 }
 0x3b6   : > { %v2687_v36 = vpop.f32.mrb[24].mxu0 }
 0x3b7   : > { %v2688_v42 = vpop.f32.mrb[25].mxu0 }
 0x3b8   : > { %v2689_v47 = vadd.f32 %v2688_v42, %v2687_v36  ;;  %v2690_v22 = vpop.f32.mrb[26].mxu0 }
 0x3b9   : > { %v2691_v7 = vpop.f32.mrb[27].mxu0 }
 0x3ba   : > { %v2027_v57 = vadd.f32 %v2689_v47, %v4853_v26  ;;  %v2692_v9 = vadd.f32 %v2691_v7, %v2690_v22 }
 0x3bc   : > { %v2635_v16 = vmul.f32 -1.442695, %v2027_v57  ;;  %v2030_v35 = vadd.f32 %v2692_v9, %v4853_v26 }
 0x3be   : > { %3251 = vpow2.f32 %v2635_v16  ;;  %v2636_v40 = vmul.f32 -1.442695, %v2030_v35 }
 0x3c0   : > { %3253 = vpow2.f32 %v2636_v40 }
 0x3c8   : > { %v3252_v38 = vpop.eup %3251 }
 0x3c9   : > { %v2109_v63 = vadd.f32 1.0, %v3252_v38 }
 0x3ca   : > { %v3254_v23 = vpop.eup %3253 }
 0x3cb   : > { %3255 = vrcp.f32 %v2109_v63  ;;  %v2110_v20 = vadd.f32 1.0, %v3254_v23 }
 0x3cd   : > { %3257 = vrcp.f32 %v2110_v20 }
 0x3d3   : > { %v2693_v52 = vpop.f32.mrb[28].mxu0 }
 0x3d4   : > { %v2694_v28 = vpop.f32.mrb[29].mxu0 }
 0x3d5   : > { %v2695_v14 = vadd.f32 %v2694_v28, %v2693_v52  ;;  %v2696_v8 = vpop.f32.mrb[30].mxu0  ;;  %v3256_v50 = vpop.eup %3255 }
 0x3d6   : > { %v2697_v27 = vpop.f32.mrb[31].mxu0  ;;  %v2145_v32 = vmul.f32 1.002, %v3256_v50 }
 0x3d7   : > { %v2035_v2 = vadd.f32 %v2695_v14, %v4853_v26  ;;  %v2698_v5 = vadd.f32 %v2697_v27, %v2696_v8  ;;  %v3258_v3 = vpop.eup %3257 }
 0x3d8   : > { %v2647_v19 = vadd.f32 -0.001, %v2145_v32  ;;  %v2146_v11 = vmul.f32 1.002, %v3258_v3 }
 0x3d9   : > { %v2637_v48 = vmul.f32 -1.442695, %v2035_v2  ;;  %v2038_v61 = vadd.f32 %v2698_v5, %v4853_v26 }
 0x3da   : > { %v2172_v25 = vsel %vm2171_vm4, %v2027_v57, %v2647_v19  ;;  %v2648_v24 = vadd.f32 -0.001, %v2146_v11 }
 0x3db   : > { %3259 = vpow2.f32 %v2637_v48  ;;  %v2638_v39 = vmul.f32 -1.442695, %v2038_v61  ;;  %2185 = vst.msk [vmem:[%s4867_s24] sm:$0xff] %vm2184_vm5, %v2172_v25 }
 0x3dc   : > { %v2173_v51 = vsel %vm2171_vm4, %v2030_v35, %v2648_v24 }
 0x3dd   : > { %3261 = vpow2.f32 %v2638_v39  ;;  %2186 = vst.msk [vmem:[%s4867_s24 + $0x8] sm:$0xff] %vm2184_vm5, %v2173_v51 }
 0x3e4   : > { %v2699_v55 = vpop.f32.mrb[32].mxu0 }
 0x3e5   : > { %v3260_v0 = vpop.eup %3259  ;;  %v2700_v10 = vpop.f32.mrb[33].mxu0 }
 0x3e6   : > { %v2111_v49 = vadd.f32 1.0, %v3260_v0  ;;  %v2701_v44 = vadd.f32 %v2700_v10, %v2699_v55  ;;  %v2702_v15 = vpop.f32.mrb[34].mxu0 }
 0x3e7   : > { %v3262_v21 = vpop.eup %3261  ;;  %v2703_v1 = vpop.f32.mrb[35].mxu0 }
 0x3e8   : > { %3263 = vrcp.f32 %v2111_v49  ;;  %v2112_v41 = vadd.f32 1.0, %v3262_v21  ;;  %v4876_v13 = vadd.f32 %v2701_v44, %v4853_v26  ;;  %v2704_v56 = vadd.f32 %v2703_v1, %v2702_v15 }
 0x3ea   : > { %3265 = vrcp.f32 %v2112_v41  ;;  %v2639_v46 = vmul.f32 -1.442695, %v4876_v13  ;;  %v4880_v58 = vadd.f32 %v2704_v56, %v4853_v26 }
 0x3ec   : > { %3267 = vpow2.f32 %v2639_v46  ;;  %v2640_v60 = vmul.f32 -1.442695, %v4880_v58  ;;  %v2705_v62 = vpop.f32.mrb[36].mxu0 }
 0x3ed   : > { %v2706_v59 = vpop.f32.mrb[37].mxu0 }
 0x3ee   : > { %3269 = vpow2.f32 %v2640_v60  ;;  %v2707_v43 = vadd.f32 %v2706_v59, %v2705_v62  ;;  %v2708_v31 = vpop.f32.mrb[38].mxu0 }
 0x3ef   : > { %v2709_v54 = vpop.f32.mrb[39].mxu0 }
 0x3f0   : > { %v4884_v17 = vadd.f32 %v2707_v43, %v4853_v26  ;;  %v2710_v4 = vadd.f32 %v2709_v54, %v2708_v31 }
 0x3f2   : > { %v3264_v37 = vpop.eup %3263  ;;  %v2641_v33 = vmul.f32 -1.442695, %v4884_v17  ;;  %v4888_v30 = vadd.f32 %v2710_v4, %v4853_v26 }
 0x3f3   : > { %v2147_v6 = vmul.f32 1.002, %v3264_v37 }
 0x3f4   : > { %v3266_v18 = vpop.eup %3265  ;;  %3271 = vpow2.f32 %v2641_v33  ;;  %v2642_v36 = vmul.f32 -1.442695, %v4888_v30  ;;  %v2711_v42 = vpop.f32.mrb[40].mxu0 }
 0x3f5   : > { %v2649_v45 = vadd.f32 -0.001, %v2147_v6  ;;  %v2148_v53 = vmul.f32 1.002, %v3266_v18  ;;  %v2712_v47 = vpop.f32.mrb[41].mxu0 }
 0x3f6   : > { %v3268_v22 = vpop.eup %3267  ;;  %3273 = vpow2.f32 %v2642_v36  ;;  %v2713_v57 = vadd.f32 %v2712_v47, %v2711_v42  ;;  %v2714_v9 = vpop.f32.mrb[42].mxu0 }
 0x3f7   : > { %v2174_v12 = vsel %vm2171_vm4, %v2035_v2, %v2649_v45  ;;  %v2650_v34 = vadd.f32 -0.001, %v2148_v53  ;;  %v2113_v16 = vadd.f32 1.0, %v3268_v22  ;;  %v2715_v35 = vpop.f32.mrb[43].mxu0 }
 0x3f8   : > { %2187 = vst.msk [vmem:[%s4867_s24 + $0x10] sm:$0xff] %vm2184_vm5, %v2174_v12  ;;  %v3270_v40 = vpop.eup %3269  ;;  %v4900_v38 = vadd.f32 %v2713_v57, %v4853_v26  ;;  %v2716_v63 = vadd.f32 %v2715_v35, %v2714_v9 }
 0x3f9   : > { %v2175_v7 = vsel %vm2171_vm4, %v2038_v61, %v2650_v34  ;;  %3275 = vrcp.f32 %v2113_v16  ;;  %v2114_v23 = vadd.f32 1.0, %v3270_v40 }
 0x3fa   : > { %2188 = vst.msk [vmem:[%s4867_s24 + $0x18] sm:$0xff] %vm2184_vm5, %v2175_v7  ;;  %v2643_v20 = vmul.f32 -1.442695, %v4900_v38  ;;  %v4904_v52 = vadd.f32 %v2716_v63, %v4853_v26 }
 0x3fb   : > { %3277 = vrcp.f32 %v2114_v23 }
 0x3fc   : > { %3279 = vpow2.f32 %v2643_v20  ;;  %v2644_v28 = vmul.f32 -1.442695, %v4904_v52 }
 0x3fe   : > { %v3272_v14 = vpop.eup %3271  ;;  %3281 = vpow2.f32 %v2644_v28 }
 0x3ff   : > { %v2115_v8 = vadd.f32 1.0, %v3272_v14 }
 0x400   : > { %v3274_v27 = vpop.eup %3273 }
 0x401   : > { %v2717_v50 = vpop.f32.mrb[44].mxu0  ;;  %3283 = vrcp.f32 %v2115_v8  ;;  %v2116_v2 = vadd.f32 1.0, %v3274_v27 }
 0x402   : > { %v2718_v5 = vpop.f32.mrb[45].mxu0 }
 0x403   : > { %v2719_v32 = vadd.f32 %v2718_v5, %v2717_v50  ;;  %v2720_v3 = vpop.f32.mrb[46].mxu0  ;;  %v3276_v48 = vpop.eup %3275  ;;  %3285 = vrcp.f32 %v2116_v2 }
 0x404   : > { %v2721_v61 = vpop.f32.mrb[47].mxu0  ;;  %v2149_v19 = vmul.f32 1.002, %v3276_v48 }
 0x405   : > { %v2067_v11 = vadd.f32 %v2719_v32, %v4853_v26  ;;  %v2722_v39 = vadd.f32 %v2721_v61, %v2720_v3  ;;  %v3278_v25 = vpop.eup %3277 }
 0x406   : > { %v3280_v24 = vpop.eup %3279  ;;  %v2651_v51 = vadd.f32 -0.001, %v2149_v19  ;;  %v2150_v0 = vmul.f32 1.002, %v3278_v25 }
 0x407   : > { %v2645_v49 = vmul.f32 -1.442695, %v2067_v11  ;;  %v2070_v21 = vadd.f32 %v2722_v39, %v4853_v26  ;;  %v2117_v55 = vadd.f32 1.0, %v3280_v24 }
 0x408   : > { %v3282_v41 = vpop.eup %3281  ;;  %v2176_v10 = vsel %vm2171_vm4, %v4876_v13, %v2651_v51  ;;  %v2652_v44 = vadd.f32 -0.001, %v2150_v0 }
 0x409   : > { %3287 = vpow2.f32 %v2645_v49  ;;  %v2646_v15 = vmul.f32 -1.442695, %v2070_v21  ;;  %2189 = vst.msk [vmem:[%s4867_s24 + $0x20] sm:$0xff] %vm2184_vm5, %v2176_v10  ;;  %v2118_v1 = vadd.f32 1.0, %v3282_v41 }
 0x40a   : > { %3289 = vrcp.f32 %v2117_v55  ;;  %v2177_v56 = vsel %vm2171_vm4, %v4880_v58, %v2652_v44 }
 0x40b   : > { %3291 = vpow2.f32 %v2646_v15  ;;  %v3284_v26 = vpop.eup %3283  ;;  %2190 = vst.msk [vmem:[%s4867_s24 + $0x28] sm:$0xff] %vm2184_vm5, %v2177_v56 }
 0x40c   : > { %3293 = vrcp.f32 %v2118_v1  ;;  %v2151_v46 = vmul.f32 1.002, %v3284_v26 }
 0x40d   : > { %v3286_v13 = vpop.eup %3285 }
 0x40e   : > { %v2653_v60 = vadd.f32 -0.001, %v2151_v46  ;;  %v2152_v62 = vmul.f32 1.002, %v3286_v13 }
 0x410   : > { %v2178_v59 = vsel %vm2171_vm4, %v4884_v17, %v2653_v60  ;;  %v2654_v43 = vadd.f32 -0.001, %v2152_v62 }
 0x411   : > { %2191 = vst.msk [vmem:[%s4867_s24 + $0x30] sm:$0xff] %vm2184_vm5, %v2178_v59 }
 0x412   : > { %v2179_v58 = vsel %vm2171_vm4, %v4888_v30, %v2654_v43 }
 0x413   : > { %v3288_v31 = vpop.eup %3287  ;;  %2192 = vst.msk [vmem:[%s4867_s24 + $0x38] sm:$0xff] %vm2184_vm5, %v2179_v58 }
 0x414   : > { %v3290_v37 = vpop.eup %3289  ;;  %v2119_v54 = vadd.f32 1.0, %v3288_v31 }
 0x415   : > { %v3292_v6 = vpop.eup %3291  ;;  %v2153_v4 = vmul.f32 1.002, %v3290_v37 }
 0x416   : > { %v3294_v18 = vpop.eup %3293  ;;  %3295 = vrcp.f32 %v2119_v54  ;;  %v2120_v45 = vadd.f32 1.0, %v3292_v6 }
 0x417   : > { %v2655_v17 = vadd.f32 -0.001, %v2153_v4  ;;  %v2154_v53 = vmul.f32 1.002, %v3294_v18 }
 0x418   : > { %3297 = vrcp.f32 %v2120_v45 }
 0x419   : > { %v2180_v33 = vsel %vm2171_vm4, %v4900_v38, %v2655_v17  ;;  %v2656_v30 = vadd.f32 -0.001, %v2154_v53 }
 0x41a   : > { %2193 = vst.msk [vmem:[%s4867_s24 + $0x40] sm:$0xff] %vm2184_vm5, %v2180_v33 }
 0x41b   : > { %v2181_v12 = vsel %vm2171_vm4, %v4904_v52, %v2656_v30 }
 0x41c   : > { %2194 = vst.msk [vmem:[%s4867_s24 + $0x48] sm:$0xff] %vm2184_vm5, %v2181_v12 }
 0x420   : > { %v3296_v34 = vpop.eup %3295 }
 0x421   : > { %v2155_v36 = vmul.f32 1.002, %v3296_v34 }
 0x422   : > { %v3298_v42 = vpop.eup %3297  ;;  %2203 = sbr.rel (!%p3578_p6) target bundleno = 1126 (0x466), region = 104 }
 0x423   : > { %v2657_v47 = vadd.f32 -0.001, %v2155_v36  ;;  %v2156_v22 = vmul.f32 1.002, %v3298_v42 }
 0x425   : > { %v2182_v7 = vsel %vm2171_vm4, %v2067_v11, %v2657_v47  ;;  %v2658_v57 = vadd.f32 -0.001, %v2156_v22 }
 0x426   : > { %2195 = vst.msk [vmem:[%s4867_s24 + $0x50] sm:$0xff] %vm2184_vm5, %v2182_v7 }
 0x427   : > { %v2183_v9 = vsel %vm2171_vm4, %v2070_v21, %v2658_v57 }
 0x428   : > { %2196 = vst.msk [vmem:[%s4867_s24 + $0x58] sm:$0xff] %vm2184_vm5, %v2183_v9 }
 0x429   : > { %s5130_s0 = smov (!%p2206_p7, %s2205_s0), 12 }
 0x42a   : > { %s2659_s23 = sshll.u32 %s5130_s0, 7 }
 0x42b   : > { %p2662_p8 = scmp.eq.s32.totalorder %s2659_s23, 0 }
 0x42c   : > { %3299 = sdivrem.u32 (!%p2662_p8), %s5130_s0, 12 }
 0x42d   : > { %2216 = sbr.rel (%p2662_p8) target bundleno = 1126 (0x466), region = 108 }
 0x435   : > { %s4960_s12 = spop.drf %3299 }
 0x436   : > { %p2663_p6 = scmp.le.s32.totalorder %s4960_s12, 0 }
 0x437   : > { %s5106_s26 = smov (!%p2663_p6), %s4956_s10  ;;  %s5107_s27 = smov (!%p2663_p6), %s4867_s24 }
 0x438   : > { %2476 = sbr.rel (%p2663_p6) target bundleno = 1097 (0x449), region = 221  ;;  %s4969_s22 = smov (!%p2663_p6), 0  }
 0x439   : > { %s4971_s18 = smov (!%p2663_p6), 0  }
 0x43f LB: >> { %v2302_v29 = vld [vmem:[%s3461_s27] sm:$0xff]  ;;  %v2304_v16 = vld [vmem:[%s3461_s27 + $0x8] sm:$0xff]  ;;  %v2306_v35 = vld [vmem:[%s3461_s27 + $0x10] sm:$0xff]  ;;  %s2326_s21 = sadd.s32 1, %s3465_s22  ;;  %s2296_s18 = sadd.s32 1, %s3469_s18   ;;  %s3469_s18 = sphi %s4971_s18, %s2296_s18   ;;  %s3465_s22 = sphi %s4969_s22, %s5108_s22   ;;  %s3461_s27 = sphi %s5107_s27, %s2331_s27   ;;  %s3457_s26 = sphi %s5106_s26, %s2332_s26  }
 0x440   : >> { %2303 = vst [vmem:[%s3457_s26] sm:$0xff] %v2302_v29  ;;  %2305 = vst [vmem:[%s3457_s26 + $0x8] sm:$0xff] %v2304_v16  ;;  %v2308_v40 = vld [vmem:[%s3461_s27 + $0x18] sm:$0xff]  ;;  %v2310_v38 = vld [vmem:[%s3461_s27 + $0x20] sm:$0xff]  ;;  %p2327_p9 = scmp.ge.s32.totalorder %s2326_s21, %s4960_s12  ;;  %p2295_p10 = scmp.ge.s32.totalorder %s2296_s18, %s4960_s12 }
 0x441   : >> { %2307 = vst [vmem:[%s3457_s26 + $0x10] sm:$0xff] %v2306_v35  ;;  %v2312_v63 = vld [vmem:[%s3461_s27 + $0x28] sm:$0xff]  ;;  %2309 = vst [vmem:[%s3457_s26 + $0x18] sm:$0xff] %v2308_v40  ;;  %v2314_v23 = vld [vmem:[%s3461_s27 + $0x30] sm:$0xff] }
 0x442   : >> { %2311 = vst [vmem:[%s3457_s26 + $0x20] sm:$0xff] %v2310_v38  ;;  %2313 = vst [vmem:[%s3457_s26 + $0x28] sm:$0xff] %v2312_v63  ;;  %v2316_v20 = vld [vmem:[%s3461_s27 + $0x38] sm:$0xff]  ;;  %v2318_v52 = vld [vmem:[%s3461_s27 + $0x40] sm:$0xff]  ;;  %s5132_s21 = smov (%p2327_p9, %s2326_s21), 0  ;;  %2298 = sbr.rel (!%p2295_p10) target bundleno = 1087 (0x43f), region = 227 }
 0x443   : >> { %2315 = vst [vmem:[%s3457_s26 + $0x30] sm:$0xff] %v2314_v23  ;;  %2317 = vst [vmem:[%s3457_s26 + $0x38] sm:$0xff] %v2316_v20  ;;  %v2320_v28 = vld [vmem:[%s3461_s27 + $0x48] sm:$0xff]  ;;  %v2322_v14 = vld [vmem:[%s3461_s27 + $0x50] sm:$0xff]  ;;  %s2329_s14 = smul.u32 96, %s5132_s21  ;;  %s5108_s22 = smov %s5132_s21 }
 0x444   : >> { %2319 = vst [vmem:[%s3457_s26 + $0x40] sm:$0xff] %v2318_v52  ;;  %v2324_v8 = vld [vmem:[%s3461_s27 + $0x58] sm:$0xff]  ;;  %2321 = vst [vmem:[%s3457_s26 + $0x48] sm:$0xff] %v2320_v28 }
 0x445   : >> { %2323 = vst [vmem:[%s3457_s26 + $0x50] sm:$0xff] %v2322_v14  ;;  %2325 = vst [vmem:[%s3457_s26 + $0x58] sm:$0xff] %v2324_v8  ;;  %s2331_s27 = scalar_lea.vmem %s4867_s24, %s2329_s14 [#allocation3]   ;;  %s2332_s26 = scalar_lea.vmem %s4956_s10, %s2329_s14  }
 0x449 PF: > { %3301 = sdivrem.u32 %s5130_s0, 12 }
 0x44a   : > { %s2664_s17 = smul.u32 96, %s4960_s12 }
 0x44c   : > { %s2337_s11 = scalar_lea.vmem %s4867_s24, %s2664_s17 [#allocation3]   ;;  %s2339_s15 = scalar_lea.vmem %s4956_s10, %s2664_s17  }
 0x452   : > { %s3302_s13 = spop.drf %3301 }
 0x453   : > { %p2666_p11 = scmp.le.s32.totalorder %s3302_s13, 0 }
 0x454   : > { %s3471_s20 = smov (!%p2666_p11), %s2339_s15   ;;  %s3475_s19 = smov (!%p2666_p11), %s2337_s11  }
 0x455   : > { %2490 = sbr.rel (%p2666_p11) target bundleno = 1126 (0x466), region = 232  ;;  %s3479_s8 = smov (!%p2666_p11), 0  }
 0x456   : > { %s3483_s9 = smov (!%p2666_p11), 0  }
 0x45c LB: >> { %v2349_v27 = vld [vmem:[%s3477_s19] sm:$0xff]  ;;  %s2351_s23 = sadd.s32 1, %s3481_s8  ;;  %s2343_s9 = sadd.s32 1, %s3485_s9   ;;  %s3485_s9 = sphi %s3483_s9, %s2343_s9   ;;  %s3481_s8 = sphi %s3479_s8, %s3480_s8   ;;  %s3477_s19 = sphi %s3475_s19, %s2356_s19   ;;  %s3473_s20 = sphi %s3471_s20, %s2357_s20  }
 0x45d   : >> { %2350 = vst [vmem:[%s3473_s20] sm:$0xff] %v2349_v27  ;;  %p2352_p12 = scmp.ge.s32.totalorder %s2351_s23, %s3302_s13  ;;  %p2342_p13 = scmp.ge.s32.totalorder %s2343_s9, %s3302_s13 }
 0x45f   : >> { %s5134_s23 = smov (%p2352_p12, %s2351_s23), 0  ;;  %2345 = sbr.rel (!%p2342_p13) target bundleno = 1116 (0x45c), region = 238 }
 0x460   : >> { %s2667_s24 = sshll.u32 %s5134_s23, 3  ;;  %s3480_s8 = smov %s5134_s23  }
 0x461   : >> { %s2356_s19 = scalar_lea.vmem %s2337_s11, %s2667_s24 [#allocation3]   ;;  %s2357_s20 = scalar_lea.vmem %s2339_s15, %s2667_s24  }
 0x466 PF: > { %s17_s30 = sadd.s32 1, %s3421_s30   ;;  %s5109_s0 = sld [smem:[#allocation4_spill]] }
 0x467   : > { %p14_p0 = scmp.ge.s32.totalorder %s17_s30, 8   ;;  %s5110_s10 = sld [smem:[#allocation5_spill]] }
 0x468   : > { %s5111_s24 = smov %s3401_s25  ;;  %s5112_s25 = smov %s3586_s16 }
 0x469   : > { %s5113_s26 = smov %s3413_s28  ;;  %s5114_s27 = smov %s3417_s29 }
 0x46a   :  { %16 = sbr.rel (!%p14_p0) target bundleno = 6 (0x6), region = 249 }
 0x46c   : > { %s5115_s28 = smov %s5109_s0 }
 0x46d   : > { %s5116_s29 = smov %s5110_s10 }

</bundles_post_ra>
